<compile_context>
chip_gen: v5e
topology: v5e:2x2
jax: 0.10.0
libtpu: 0.0.40
codegen_flags: <defaults>
</compile_context>

<pallas_src>
import jax
import jax.numpy as jnp
from jax.experimental import pallas as pl
from jax.experimental.pallas import tpu as pltpu

# ----------------------------- model config ---------------------------------
VOCAB_SIZE = 32
EMBED_DIM = 32
HIDDEN_DIM = 32
NUM_LAYERS = 2
BATCH = 2
SEQ = 8


# --------------------------- fused forward kernel ----------------------------
def _music_rnn_kernel(onehot_ref, table_ref, bias_ref, rec_ref,
                      fcw_ref, fcb_ref, h0_ref, c0_ref,
                      logits_ref, hn_ref, cn_ref, hs_ref):
    """Entire MusicRNN forward in one kernel invocation (no grid).

    onehot_ref : (T*B, V) f32  one-hot tokens, time-major (row r = t*B + b)
    table_ref  : (V, 8H) f32   embedding pre-folded with layer-0 W_ih, columns
                               interleaved gate-major [i0|i1|f0|f1|g0|g1|o0|o1],
                               layer-1 columns are zero
    bias_ref   : (1, 8H) f32   [b0|b1] interleaved the same way
    rec_ref    : (2H, 8H) f32  fused recurrent block: rows 0:H -> [whh0|wih1],
                               rows H:2H -> [0|whh1] (gate-interleaved columns)
    fcw_ref    : (2H, V) f32   FC weight zero-padded on the layer-0 rows
    fcb_ref    : (1, V)  f32
    h0_ref/c0_ref : (B, 2H)    packed initial state [layer0 | layer1]
    logits_ref : (T*B, V)      time-major logits
    hn_ref/cn_ref : (B, 2H)    packed final state
    hs_ref     : (T*B, 2H)     VMEM scratch slab of per-step hidden states
    """
    B, H2 = h0_ref.shape
    H = H2 // 2
    TB = onehot_ref.shape[0]
    T = TB // B

    # Hoisted input contribution for ALL timesteps: one matmul.
    # Layer-0 lanes: embedding[tok] @ W_ih0 + b0 (exact one-hot select).
    # Layer-1 lanes: b1 (its input contribution comes from the fused recurrence).
    xwb = jnp.dot(onehot_ref[...], table_ref[...],
                  preferred_element_type=jnp.float32) + bias_ref[...]   # (T*B, 8H)

    rec = rec_ref[...]
    h = h0_ref[...]                                                     # (B, 2H)
    c = c0_ref[...]
    lane = jax.lax.broadcasted_iota(jnp.int32, (B, H2), 1)
    l0_mask = lane < H                                                  # layer-0 half

    # Wavefront: at step w, layer 0 computes timestep w and layer 1 computes
    # timestep w-1, fused into a single (B, 2H) @ (2H, 8H) matmul.
    for w in range(T + 1):                       # fully unrolled, static T
        tw = w if w < T else T - 1               # layer-0 part discarded at w == T
        gates = xwb[tw * B:(tw + 1) * B, :] + jnp.dot(
            h, rec, preferred_element_type=jnp.float32)                 # (B, 8H)

        # Activations on full gate vregs, sliced afterwards.
        sig = jax.nn.sigmoid(gates)
        tnh = jnp.tanh(gates)
        i_a = sig[:, 0 * H2:1 * H2]              # [i0 | i1]
        f_a = sig[:, 1 * H2:2 * H2]              # [f0 | f1]
        g_a = tnh[:, 2 * H2:3 * H2]              # [g0 | g1]
        o_a = sig[:, 3 * H2:4 * H2]              # [o0 | o1]

        c_new = f_a * c + i_a * g_a
        h_new = o_a * jnp.tanh(c_new)

        if w == 0:                               # layer 1 not active yet
            c = jnp.where(l0_mask, c_new, c)
            h = jnp.where(l0_mask, h_new, h)
        elif w == T:                             # layer 0 already finished
            c = jnp.where(l0_mask, c, c_new)
            h = jnp.where(l0_mask, h, h_new)
        else:
            c = c_new
            h = h_new

        if w >= 1:
            # Layer-1 half of h now holds h1_{w-1}; store the full packed row
            # (layer-0 half is zeroed out by the padded FC weight later).
            hs_ref[(w - 1) * B:w * B, :] = h

    hn_ref[...] = h
    cn_ref[...] = c

    # TODO(synk): nn.LSTM inter-layer dropout and self.dropout are identity in
    # eval mode; not applied.
    # Final projection: ONE matmul over the scratch slab, time-major output.
    logits_ref[...] = jnp.dot(hs_ref[...], fcw_ref[...],
                              preferred_element_type=jnp.float32) + fcb_ref[...]


def music_rnn_forward(fused, x_tokens, hidden=None):
    """x_tokens: (B, T) int32. Returns (logits (B,T,V), (h_n (L,B,H), c_n (L,B,H)))."""
    B, T = x_tokens.shape
    L, H, V = NUM_LAYERS, HIDDEN_DIM, VOCAB_SIZE
    H2 = 2 * H

    # Tokens -> time-major one-hot in the wrapper (2 KiB); keeps the iota /
    # compare prologue out of the kernel entirely.
    tok_tm = jnp.transpose(x_tokens).reshape(T * B).astype(jnp.int32)
    onehot = jax.nn.one_hot(tok_tm, V, dtype=jnp.float32)              # (T*B, V)

    if hidden is None:
        h0 = jnp.zeros((L, B, H), jnp.float32)
        c0 = jnp.zeros((L, B, H), jnp.float32)
    else:
        h0, c0 = hidden
    h0p = jnp.concatenate([h0[0], h0[1]], axis=1)                      # (B, 2H)
    c0p = jnp.concatenate([c0[0], c0[1]], axis=1)

    vmem = pl.BlockSpec(memory_space=pltpu.MemorySpace.VMEM)
    out_shapes = (
        jax.ShapeDtypeStruct((T * B, V), jnp.float32),                 # time-major logits
        jax.ShapeDtypeStruct((B, H2), jnp.float32),                    # packed h_n
        jax.ShapeDtypeStruct((B, H2), jnp.float32),                    # packed c_n
    )
    logits_tm, hn_p, cn_p = pl.pallas_call(
        _music_rnn_kernel,
        in_specs=[vmem] * 8,
        out_specs=(vmem, vmem, vmem),
        out_shape=out_shapes,
        scratch_shapes=[pltpu.VMEM((T * B, H2), jnp.float32)],
    )(onehot, fused["table"], fused["bias"], fused["rec_w"],
      fused["fc_w_pad"], fused["fc_b"], h0p, c0p)

    # Tiny (2 KiB) layout plumbing in XLA, not in the kernel.
    logits = logits_tm.reshape(T, B, V).transpose(1, 0, 2)             # (B, T, V)
    h_n = jnp.stack([hn_p[:, :H], hn_p[:, H:]], axis=0)
    c_n = jnp.stack([cn_p[:, :H], cn_p[:, H:]], axis=0)
    return logits, (h_n, c_n)


# --------------------------- parameter init / fuse ----------------------------
def init_params(key, vocab_size=VOCAB_SIZE, embed_dim=EMBED_DIM,
                hidden_dim=HIDDEN_DIM, num_layers=NUM_LAYERS):
    keys = jax.random.split(key, 3 + 4 * num_layers)
    params = {}
    # nn.Embedding default init: N(0, 1)
    params["embedding"] = jax.random.normal(keys[0], (vocab_size, embed_dim),
                                            dtype=jnp.float32)
    k = 1.0 / jnp.sqrt(hidden_dim)
    lstm = []
    for layer in range(num_layers):
        in_dim = embed_dim if layer == 0 else hidden_dim
        kk = keys[1 + 4 * layer: 5 + 4 * layer]
        # PyTorch LSTM init: U(-1/sqrt(H), 1/sqrt(H)); fused gate order [i|f|g|o].
        w_ih = jax.random.uniform(kk[0], (in_dim, 4 * hidden_dim), jnp.float32, -k, k)
        w_hh = jax.random.uniform(kk[1], (hidden_dim, 4 * hidden_dim), jnp.float32, -k, k)
        b_ih = jax.random.uniform(kk[2], (1, 4 * hidden_dim), jnp.float32, -k, k)
        b_hh = jax.random.uniform(kk[3], (1, 4 * hidden_dim), jnp.float32, -k, k)
        lstm.append({"w_ih": w_ih, "w_hh": w_hh, "b": b_ih + b_hh})
    params["lstm"] = lstm
    kf = 1.0 / jnp.sqrt(hidden_dim)
    params["fc_w"] = jax.random.uniform(keys[-2], (hidden_dim, vocab_size),
                                        jnp.float32, -kf, kf)
    params["fc_b"] = jax.random.uniform(keys[-1], (1, vocab_size),
                                        jnp.float32, -kf, kf)
    return params


def fuse_params(params):
    """One-time prep: fold the embedding with layer-0 W_ih and build the
    gate-interleaved, block-structured weights used by the wavefront kernel."""
    assert NUM_LAYERS == 2, "wavefront fusion is specialized to 2 LSTM layers"
    H, V = HIDDEN_DIM, VOCAB_SIZE
    hp = jax.lax.Precision.HIGHEST
    p0, p1 = params["lstm"]

    emb_wih0 = jnp.dot(params["embedding"], p0["w_ih"], precision=hp)   # (V, 4H)

    def interleave(a0, a1):
        # (..., 4H) x2 -> (..., 8H) with columns [i0|i1|f0|f1|g0|g1|o0|o1].
        parts = []
        for g in range(4):
            parts.append(a0[..., g * H:(g + 1) * H])
            parts.append(a1[..., g * H:(g + 1) * H])
        return jnp.concatenate(parts, axis=-1)

    table = interleave(emb_wih0, jnp.zeros((V, 4 * H), jnp.float32))     # (V, 8H)
    bias = interleave(p0["b"], p1["b"])                                  # (1, 8H)
    rec_top = interleave(p0["w_hh"], p1["w_ih"])                         # (H, 8H)
    rec_bot = interleave(jnp.zeros((H, 4 * H), jnp.float32), p1["w_hh"]) # (H, 8H)
    rec_w = jnp.concatenate([rec_top, rec_bot], axis=0)                  # (2H, 8H)
    fc_w_pad = jnp.concatenate([jnp.zeros((H, V), jnp.float32),
                                params["fc_w"]], axis=0)                 # (2H, V)
    return {"table": table, "bias": bias, "rec_w": rec_w,
            "fc_w_pad": fc_w_pad, "fc_b": params["fc_b"]}


# ------------------------------ pure-JAX reference ----------------------------
def _reference_forward(params, x_tokens, hidden=None):
    B, T = x_tokens.shape
    H, L = HIDDEN_DIM, NUM_LAYERS
    hp = jax.lax.Precision.HIGHEST
    dot = lambda a, w: jnp.dot(a, w, precision=hp)

    embeds = jnp.take(params["embedding"], x_tokens, axis=0)          # (B, T, E)
    x = jnp.transpose(embeds, (1, 0, 2))                              # (T, B, E)
    if hidden is None:
        h0 = jnp.zeros((L, B, H), jnp.float32)
        c0 = jnp.zeros((L, B, H), jnp.float32)
    else:
        h0, c0 = hidden

    h_fin, c_fin = [], []
    for layer in range(L):
        p = params["lstm"][layer]
        h, c = h0[layer], c0[layer]
        outs = []
        for t in range(T):
            g = dot(x[t], p["w_ih"]) + dot(h, p["w_hh"]) + p["b"]
            i_g = jax.nn.sigmoid(g[:, 0:H])
            f_g = jax.nn.sigmoid(g[:, H:2 * H])
            g_g = jnp.tanh(g[:, 2 * H:3 * H])
            o_g = jax.nn.sigmoid(g[:, 3 * H:4 * H])
            c = f_g * c + i_g * g_g
            h = o_g * jnp.tanh(c)
            outs.append(h)
        x = jnp.stack(outs, axis=0)
        h_fin.append(h)
        c_fin.append(c)

    logits = dot(x.reshape(T * B, H), params["fc_w"]) + params["fc_b"]
    logits = logits.reshape(T, B, VOCAB_SIZE).transpose(1, 0, 2)
    return logits, (jnp.stack(h_fin, 0), jnp.stack(c_fin, 0))


# -------------------------------- main ----------------------------------------
if __name__ == "__main__":
    key = jax.random.PRNGKey(0)
    k_params, k_tokens = jax.random.split(key)

    params = init_params(k_params)
    fused = fuse_params(params)
    x_tokens = jax.random.randint(k_tokens, (BATCH, SEQ), 0, VOCAB_SIZE,
                                  dtype=jnp.int32)

    fwd = jax.jit(music_rnn_forward)
    logits, (h_n, c_n) = fwd(fused, x_tokens)
    jax.block_until_ready((logits, h_n, c_n))

    assert logits.shape == (BATCH, SEQ, VOCAB_SIZE)
    assert h_n.shape == (NUM_LAYERS, BATCH, HIDDEN_DIM)
    assert c_n.shape == (NUM_LAYERS, BATCH, HIDDEN_DIM)

    # Correctness check against a pure-JAX reference of the PyTorch module.
    ref_logits, (ref_hn, ref_cn) = _reference_forward(params, x_tokens)
    assert float(jnp.max(jnp.abs(logits - ref_logits))) < 1e-2
    assert float(jnp.max(jnp.abs(h_n - ref_hn))) < 1e-2
    assert float(jnp.max(jnp.abs(c_n - ref_cn))) < 1e-2

    print("KERNEL_OK")
</pallas_src>

<mosaic_0001>
module attributes {stable_mosaic.version = 11 : i64} {
  func.func @_music_rnn_kernel(%arg0: memref<16x32xf32, #tpu.memory_space<vmem>>, %arg1: memref<32x256xf32, #tpu.memory_space<vmem>>, %arg2: memref<1x256xf32, #tpu.memory_space<vmem>>, %arg3: memref<64x256xf32, #tpu.memory_space<vmem>>, %arg4: memref<64x32xf32, #tpu.memory_space<vmem>>, %arg5: memref<1x32xf32, #tpu.memory_space<vmem>>, %arg6: memref<2x64xf32, #tpu.memory_space<vmem>>, %arg7: memref<2x64xf32, #tpu.memory_space<vmem>>, %arg8: memref<16x32xf32, #tpu.memory_space<vmem>>, %arg9: memref<2x64xf32, #tpu.memory_space<vmem>>, %arg10: memref<2x64xf32, #tpu.memory_space<vmem>>, %arg11: memref<16x64xf32, #tpu.memory_space<vmem>>) attributes {dimension_semantics = [], scalar_prefetch = 0 : i64, scratch_operands = 1 : i64, tpu.core_type = #tpu.core_type<tc>} {
    %c0 = arith.constant 0 : index
    %c0_0 = arith.constant 0 : index
    %0 = vector.load %arg0[%c0, %c0_0] : memref<16x32xf32, #tpu.memory_space<vmem>>, vector<16x32xf32>
    %c0_1 = arith.constant 0 : index
    %c0_2 = arith.constant 0 : index
    %1 = vector.load %arg1[%c0_1, %c0_2] : memref<32x256xf32, #tpu.memory_space<vmem>>, vector<32x256xf32>
    %cst = arith.constant dense<0.000000e+00> : vector<16x256xf32>
    %2 = tpu.matmul %0, %1, %cst {dimension_numbers = #tpu.dot_dimension_numbers<[1], [0], [0], [1], [0, 0, 1, 1], [], []>} : vector<16x32xf32>, vector<32x256xf32>, vector<16x256xf32> -> vector<16x256xf32>
    %c0_3 = arith.constant 0 : index
    %c0_4 = arith.constant 0 : index
    %3 = vector.load %arg2[%c0_3, %c0_4] : memref<1x256xf32, #tpu.memory_space<vmem>>, vector<1x256xf32>
    %4 = vector.broadcast %3 : vector<1x256xf32> to vector<16x256xf32>
    %5 = arith.addf %2, %4 : vector<16x256xf32>
    %c0_5 = arith.constant 0 : index
    %c0_6 = arith.constant 0 : index
    %6 = vector.load %arg3[%c0_5, %c0_6] : memref<64x256xf32, #tpu.memory_space<vmem>>, vector<64x256xf32>
    %c0_7 = arith.constant 0 : index
    %c0_8 = arith.constant 0 : index
    %7 = vector.load %arg6[%c0_7, %c0_8] : memref<2x64xf32, #tpu.memory_space<vmem>>, vector<2x64xf32>
    %c0_9 = arith.constant 0 : index
    %c0_10 = arith.constant 0 : index
    %8 = vector.load %arg7[%c0_9, %c0_10] : memref<2x64xf32, #tpu.memory_space<vmem>>, vector<2x64xf32>
    %9 = tpu.iota {dimensions = array<i32: 1>} : vector<2x64xi32>
    %c32_i32 = arith.constant 32 : i32
    %10 = vector.broadcast %c32_i32 : i32 to vector<2x64xi32>
    %11 = arith.cmpi slt, %9, %10 : vector<2x64xi32>
    %12 = vector.extract_strided_slice %5 {offsets = [0, 0], sizes = [2, 256], strides = [1, 1]} : vector<16x256xf32> to vector<2x256xf32>
    %cst_11 = arith.constant dense<0.000000e+00> : vector<2x256xf32>
    %13 = tpu.matmul %7, %6, %cst_11 {dimension_numbers = #tpu.dot_dimension_numbers<[1], [0], [0], [1], [0, 0, 1, 1], [], []>} : vector<2x64xf32>, vector<64x256xf32>, vector<2x256xf32> -> vector<2x256xf32>
    %14 = arith.addf %12, %13 : vector<2x256xf32>
    %15 = arith.negf %14 : vector<2x256xf32>
    %16 = math.exp %15 : vector<2x256xf32>
    %cst_12 = arith.constant 1.000000e+00 : f32
    %17 = vector.broadcast %cst_12 : f32 to vector<2x256xf32>
    %18 = arith.addf %17, %16 : vector<2x256xf32>
    %19 = arith.divf %17, %18 : vector<2x256xf32>
    %20 = math.tanh %14 : vector<2x256xf32>
    %21 = vector.extract_strided_slice %19 {offsets = [0, 0], sizes = [2, 64], strides = [1, 1]} : vector<2x256xf32> to vector<2x64xf32>
    %22 = vector.extract_strided_slice %19 {offsets = [0, 64], sizes = [2, 64], strides = [1, 1]} : vector<2x256xf32> to vector<2x64xf32>
    %23 = vector.extract_strided_slice %20 {offsets = [0, 128], sizes = [2, 64], strides = [1, 1]} : vector<2x256xf32> to vector<2x64xf32>
    %24 = vector.extract_strided_slice %19 {offsets = [0, 192], sizes = [2, 64], strides = [1, 1]} : vector<2x256xf32> to vector<2x64xf32>
    %25 = arith.mulf %22, %8 : vector<2x64xf32>
    %26 = arith.mulf %21, %23 : vector<2x64xf32>
    %27 = arith.addf %25, %26 : vector<2x64xf32>
    %28 = math.tanh %27 : vector<2x64xf32>
    %29 = arith.mulf %24, %28 : vector<2x64xf32>
    %30 = arith.select %11, %27, %8 : vector<2x64xi1>, vector<2x64xf32>
    %31 = arith.select %11, %29, %7 : vector<2x64xi1>, vector<2x64xf32>
    %32 = vector.extract_strided_slice %5 {offsets = [2, 0], sizes = [2, 256], strides = [1, 1]} : vector<16x256xf32> to vector<2x256xf32>
    %cst_13 = arith.constant dense<0.000000e+00> : vector<2x256xf32>
    %33 = tpu.matmul %31, %6, %cst_13 {dimension_numbers = #tpu.dot_dimension_numbers<[1], [0], [0], [1], [0, 0, 1, 1], [], []>} : vector<2x64xf32>, vector<64x256xf32>, vector<2x256xf32> -> vector<2x256xf32>
    %34 = arith.addf %32, %33 : vector<2x256xf32>
    %35 = arith.negf %34 : vector<2x256xf32>
    %36 = math.exp %35 : vector<2x256xf32>
    %cst_14 = arith.constant 1.000000e+00 : f32
    %37 = vector.broadcast %cst_14 : f32 to vector<2x256xf32>
    %38 = arith.addf %37, %36 : vector<2x256xf32>
    %39 = arith.divf %37, %38 : vector<2x256xf32>
    %40 = math.tanh %34 : vector<2x256xf32>
    %41 = vector.extract_strided_slice %39 {offsets = [0, 0], sizes = [2, 64], strides = [1, 1]} : vector<2x256xf32> to vector<2x64xf32>
    %42 = vector.extract_strided_slice %39 {offsets = [0, 64], sizes = [2, 64], strides = [1, 1]} : vector<2x256xf32> to vector<2x64xf32>
    %43 = vector.extract_strided_slice %40 {offsets = [0, 128], sizes = [2, 64], strides = [1, 1]} : vector<2x256xf32> to vector<2x64xf32>
    %44 = vector.extract_strided_slice %39 {offsets = [0, 192], sizes = [2, 64], strides = [1, 1]} : vector<2x256xf32> to vector<2x64xf32>
    %45 = arith.mulf %42, %30 : vector<2x64xf32>
    %46 = arith.mulf %41, %43 : vector<2x64xf32>
    %47 = arith.addf %45, %46 : vector<2x64xf32>
    %48 = math.tanh %47 : vector<2x64xf32>
    %49 = arith.mulf %44, %48 : vector<2x64xf32>
    %c0_15 = arith.constant 0 : index
    %c0_16 = arith.constant 0 : index
    %50 = vector.load %arg11[%c0_15, %c0_16] : memref<16x64xf32, #tpu.memory_space<vmem>>, vector<2x64xf32>
    tpu.vector_store %arg11[%c0_15, %c0_16], %49 {strides = array<i32>} : memref<16x64xf32, #tpu.memory_space<vmem>>, vector<2x64xf32>,
    %51 = vector.extract_strided_slice %5 {offsets = [4, 0], sizes = [2, 256], strides = [1, 1]} : vector<16x256xf32> to vector<2x256xf32>
    %cst_17 = arith.constant dense<0.000000e+00> : vector<2x256xf32>
    %52 = tpu.matmul %49, %6, %cst_17 {dimension_numbers = #tpu.dot_dimension_numbers<[1], [0], [0], [1], [0, 0, 1, 1], [], []>} : vector<2x64xf32>, vector<64x256xf32>, vector<2x256xf32> -> vector<2x256xf32>
    %53 = arith.addf %51, %52 : vector<2x256xf32>
    %54 = arith.negf %53 : vector<2x256xf32>
    %55 = math.exp %54 : vector<2x256xf32>
    %cst_18 = arith.constant 1.000000e+00 : f32
    %56 = vector.broadcast %cst_18 : f32 to vector<2x256xf32>
    %57 = arith.addf %56, %55 : vector<2x256xf32>
    %58 = arith.divf %56, %57 : vector<2x256xf32>
    %59 = math.tanh %53 : vector<2x256xf32>
    %60 = vector.extract_strided_slice %58 {offsets = [0, 0], sizes = [2, 64], strides = [1, 1]} : vector<2x256xf32> to vector<2x64xf32>
    %61 = vector.extract_strided_slice %58 {offsets = [0, 64], sizes = [2, 64], strides = [1, 1]} : vector<2x256xf32> to vector<2x64xf32>
    %62 = vector.extract_strided_slice %59 {offsets = [0, 128], sizes = [2, 64], strides = [1, 1]} : vector<2x256xf32> to vector<2x64xf32>
    %63 = vector.extract_strided_slice %58 {offsets = [0, 192], sizes = [2, 64], strides = [1, 1]} : vector<2x256xf32> to vector<2x64xf32>
    %64 = arith.mulf %61, %47 : vector<2x64xf32>
    %65 = arith.mulf %60, %62 : vector<2x64xf32>
    %66 = arith.addf %64, %65 : vector<2x64xf32>
    %67 = math.tanh %66 : vector<2x64xf32>
    %68 = arith.mulf %63, %67 : vector<2x64xf32>
    %c2 = arith.constant 2 : index
    %c0_19 = arith.constant 0 : index
    %69 = vector.load %arg11[%c2, %c0_19] : memref<16x64xf32, #tpu.memory_space<vmem>>, vector<2x64xf32>
    tpu.vector_store %arg11[%c2, %c0_19], %68 {strides = array<i32>} : memref<16x64xf32, #tpu.memory_space<vmem>>, vector<2x64xf32>,
    %70 = vector.extract_strided_slice %5 {offsets = [6, 0], sizes = [2, 256], strides = [1, 1]} : vector<16x256xf32> to vector<2x256xf32>
    %cst_20 = arith.constant dense<0.000000e+00> : vector<2x256xf32>
    %71 = tpu.matmul %68, %6, %cst_20 {dimension_numbers = #tpu.dot_dimension_numbers<[1], [0], [0], [1], [0, 0, 1, 1], [], []>} : vector<2x64xf32>, vector<64x256xf32>, vector<2x256xf32> -> vector<2x256xf32>
    %72 = arith.addf %70, %71 : vector<2x256xf32>
    %73 = arith.negf %72 : vector<2x256xf32>
    %74 = math.exp %73 : vector<2x256xf32>
    %cst_21 = arith.constant 1.000000e+00 : f32
    %75 = vector.broadcast %cst_21 : f32 to vector<2x256xf32>
    %76 = arith.addf %75, %74 : vector<2x256xf32>
    %77 = arith.divf %75, %76 : vector<2x256xf32>
    %78 = math.tanh %72 : vector<2x256xf32>
    %79 = vector.extract_strided_slice %77 {offsets = [0, 0], sizes = [2, 64], strides = [1, 1]} : vector<2x256xf32> to vector<2x64xf32>
    %80 = vector.extract_strided_slice %77 {offsets = [0, 64], sizes = [2, 64], strides = [1, 1]} : vector<2x256xf32> to vector<2x64xf32>
    %81 = vector.extract_strided_slice %78 {offsets = [0, 128], sizes = [2, 64], strides = [1, 1]} : vector<2x256xf32> to vector<2x64xf32>
    %82 = vector.extract_strided_slice %77 {offsets = [0, 192], sizes = [2, 64], strides = [1, 1]} : vector<2x256xf32> to vector<2x64xf32>
    %83 = arith.mulf %80, %66 : vector<2x64xf32>
    %84 = arith.mulf %79, %81 : vector<2x64xf32>
    %85 = arith.addf %83, %84 : vector<2x64xf32>
    %86 = math.tanh %85 : vector<2x64xf32>
    %87 = arith.mulf %82, %86 : vector<2x64xf32>
    %c4 = arith.constant 4 : index
    %c0_22 = arith.constant 0 : index
    %88 = vector.load %arg11[%c4, %c0_22] : memref<16x64xf32, #tpu.memory_space<vmem>>, vector<2x64xf32>
    tpu.vector_store %arg11[%c4, %c0_22], %87 {strides = array<i32>} : memref<16x64xf32, #tpu.memory_space<vmem>>, vector<2x64xf32>,
    %89 = vector.extract_strided_slice %5 {offsets = [8, 0], sizes = [2, 256], strides = [1, 1]} : vector<16x256xf32> to vector<2x256xf32>
    %cst_23 = arith.constant dense<0.000000e+00> : vector<2x256xf32>
    %90 = tpu.matmul %87, %6, %cst_23 {dimension_numbers = #tpu.dot_dimension_numbers<[1], [0], [0], [1], [0, 0, 1, 1], [], []>} : vector<2x64xf32>, vector<64x256xf32>, vector<2x256xf32> -> vector<2x256xf32>
    %91 = arith.addf %89, %90 : vector<2x256xf32>
    %92 = arith.negf %91 : vector<2x256xf32>
    %93 = math.exp %92 : vector<2x256xf32>
    %cst_24 = arith.constant 1.000000e+00 : f32
    %94 = vector.broadcast %cst_24 : f32 to vector<2x256xf32>
    %95 = arith.addf %94, %93 : vector<2x256xf32>
    %96 = arith.divf %94, %95 : vector<2x256xf32>
    %97 = math.tanh %91 : vector<2x256xf32>
    %98 = vector.extract_strided_slice %96 {offsets = [0, 0], sizes = [2, 64], strides = [1, 1]} : vector<2x256xf32> to vector<2x64xf32>
    %99 = vector.extract_strided_slice %96 {offsets = [0, 64], sizes = [2, 64], strides = [1, 1]} : vector<2x256xf32> to vector<2x64xf32>
    %100 = vector.extract_strided_slice %97 {offsets = [0, 128], sizes = [2, 64], strides = [1, 1]} : vector<2x256xf32> to vector<2x64xf32>
    %101 = vector.extract_strided_slice %96 {offsets = [0, 192], sizes = [2, 64], strides = [1, 1]} : vector<2x256xf32> to vector<2x64xf32>
    %102 = arith.mulf %99, %85 : vector<2x64xf32>
    %103 = arith.mulf %98, %100 : vector<2x64xf32>
    %104 = arith.addf %102, %103 : vector<2x64xf32>
    %105 = math.tanh %104 : vector<2x64xf32>
    %106 = arith.mulf %101, %105 : vector<2x64xf32>
    %c6 = arith.constant 6 : index
    %c0_25 = arith.constant 0 : index
    %107 = vector.load %arg11[%c6, %c0_25] : memref<16x64xf32, #tpu.memory_space<vmem>>, vector<2x64xf32>
    tpu.vector_store %arg11[%c6, %c0_25], %106 {strides = array<i32>} : memref<16x64xf32, #tpu.memory_space<vmem>>, vector<2x64xf32>,
    %108 = vector.extract_strided_slice %5 {offsets = [10, 0], sizes = [2, 256], strides = [1, 1]} : vector<16x256xf32> to vector<2x256xf32>
    %cst_26 = arith.constant dense<0.000000e+00> : vector<2x256xf32>
    %109 = tpu.matmul %106, %6, %cst_26 {dimension_numbers = #tpu.dot_dimension_numbers<[1], [0], [0], [1], [0, 0, 1, 1], [], []>} : vector<2x64xf32>, vector<64x256xf32>, vector<2x256xf32> -> vector<2x256xf32>
    %110 = arith.addf %108, %109 : vector<2x256xf32>
    %111 = arith.negf %110 : vector<2x256xf32>
    %112 = math.exp %111 : vector<2x256xf32>
    %cst_27 = arith.constant 1.000000e+00 : f32
    %113 = vector.broadcast %cst_27 : f32 to vector<2x256xf32>
    %114 = arith.addf %113, %112 : vector<2x256xf32>
    %115 = arith.divf %113, %114 : vector<2x256xf32>
    %116 = math.tanh %110 : vector<2x256xf32>
    %117 = vector.extract_strided_slice %115 {offsets = [0, 0], sizes = [2, 64], strides = [1, 1]} : vector<2x256xf32> to vector<2x64xf32>
    %118 = vector.extract_strided_slice %115 {offsets = [0, 64], sizes = [2, 64], strides = [1, 1]} : vector<2x256xf32> to vector<2x64xf32>
    %119 = vector.extract_strided_slice %116 {offsets = [0, 128], sizes = [2, 64], strides = [1, 1]} : vector<2x256xf32> to vector<2x64xf32>
    %120 = vector.extract_strided_slice %115 {offsets = [0, 192], sizes = [2, 64], strides = [1, 1]} : vector<2x256xf32> to vector<2x64xf32>
    %121 = arith.mulf %118, %104 : vector<2x64xf32>
    %122 = arith.mulf %117, %119 : vector<2x64xf32>
    %123 = arith.addf %121, %122 : vector<2x64xf32>
    %124 = math.tanh %123 : vector<2x64xf32>
    %125 = arith.mulf %120, %124 : vector<2x64xf32>
    %c8 = arith.constant 8 : index
    %c0_28 = arith.constant 0 : index
    %126 = vector.load %arg11[%c8, %c0_28] : memref<16x64xf32, #tpu.memory_space<vmem>>, vector<2x64xf32>
    tpu.vector_store %arg11[%c8, %c0_28], %125 {strides = array<i32>} : memref<16x64xf32, #tpu.memory_space<vmem>>, vector<2x64xf32>,
    %127 = vector.extract_strided_slice %5 {offsets = [12, 0], sizes = [2, 256], strides = [1, 1]} : vector<16x256xf32> to vector<2x256xf32>
    %cst_29 = arith.constant dense<0.000000e+00> : vector<2x256xf32>
    %128 = tpu.matmul %125, %6, %cst_29 {dimension_numbers = #tpu.dot_dimension_numbers<[1], [0], [0], [1], [0, 0, 1, 1], [], []>} : vector<2x64xf32>, vector<64x256xf32>, vector<2x256xf32> -> vector<2x256xf32>
    %129 = arith.addf %127, %128 : vector<2x256xf32>
    %130 = arith.negf %129 : vector<2x256xf32>
    %131 = math.exp %130 : vector<2x256xf32>
    %cst_30 = arith.constant 1.000000e+00 : f32
    %132 = vector.broadcast %cst_30 : f32 to vector<2x256xf32>
    %133 = arith.addf %132, %131 : vector<2x256xf32>
    %134 = arith.divf %132, %133 : vector<2x256xf32>
    %135 = math.tanh %129 : vector<2x256xf32>
    %136 = vector.extract_strided_slice %134 {offsets = [0, 0], sizes = [2, 64], strides = [1, 1]} : vector<2x256xf32> to vector<2x64xf32>
    %137 = vector.extract_strided_slice %134 {offsets = [0, 64], sizes = [2, 64], strides = [1, 1]} : vector<2x256xf32> to vector<2x64xf32>
    %138 = vector.extract_strided_slice %135 {offsets = [0, 128], sizes = [2, 64], strides = [1, 1]} : vector<2x256xf32> to vector<2x64xf32>
    %139 = vector.extract_strided_slice %134 {offsets = [0, 192], sizes = [2, 64], strides = [1, 1]} : vector<2x256xf32> to vector<2x64xf32>
    %140 = arith.mulf %137, %123 : vector<2x64xf32>
    %141 = arith.mulf %136, %138 : vector<2x64xf32>
    %142 = arith.addf %140, %141 : vector<2x64xf32>
    %143 = math.tanh %142 : vector<2x64xf32>
    %144 = arith.mulf %139, %143 : vector<2x64xf32>
    %c10 = arith.constant 10 : index
    %c0_31 = arith.constant 0 : index
    %145 = vector.load %arg11[%c10, %c0_31] : memref<16x64xf32, #tpu.memory_space<vmem>>, vector<2x64xf32>
    tpu.vector_store %arg11[%c10, %c0_31], %144 {strides = array<i32>} : memref<16x64xf32, #tpu.memory_space<vmem>>, vector<2x64xf32>,
    %146 = vector.extract_strided_slice %5 {offsets = [14, 0], sizes = [2, 256], strides = [1, 1]} : vector<16x256xf32> to vector<2x256xf32>
    %cst_32 = arith.constant dense<0.000000e+00> : vector<2x256xf32>
    %147 = tpu.matmul %144, %6, %cst_32 {dimension_numbers = #tpu.dot_dimension_numbers<[1], [0], [0], [1], [0, 0, 1, 1], [], []>} : vector<2x64xf32>, vector<64x256xf32>, vector<2x256xf32> -> vector<2x256xf32>
    %148 = arith.addf %146, %147 : vector<2x256xf32>
    %149 = arith.negf %148 : vector<2x256xf32>
    %150 = math.exp %149 : vector<2x256xf32>
    %cst_33 = arith.constant 1.000000e+00 : f32
    %151 = vector.broadcast %cst_33 : f32 to vector<2x256xf32>
    %152 = arith.addf %151, %150 : vector<2x256xf32>
    %153 = arith.divf %151, %152 : vector<2x256xf32>
    %154 = math.tanh %148 : vector<2x256xf32>
    %155 = vector.extract_strided_slice %153 {offsets = [0, 0], sizes = [2, 64], strides = [1, 1]} : vector<2x256xf32> to vector<2x64xf32>
    %156 = vector.extract_strided_slice %153 {offsets = [0, 64], sizes = [2, 64], strides = [1, 1]} : vector<2x256xf32> to vector<2x64xf32>
    %157 = vector.extract_strided_slice %154 {offsets = [0, 128], sizes = [2, 64], strides = [1, 1]} : vector<2x256xf32> to vector<2x64xf32>
    %158 = vector.extract_strided_slice %153 {offsets = [0, 192], sizes = [2, 64], strides = [1, 1]} : vector<2x256xf32> to vector<2x64xf32>
    %159 = arith.mulf %156, %142 : vector<2x64xf32>
    %160 = arith.mulf %155, %157 : vector<2x64xf32>
    %161 = arith.addf %159, %160 : vector<2x64xf32>
    %162 = math.tanh %161 : vector<2x64xf32>
    %163 = arith.mulf %158, %162 : vector<2x64xf32>
    %c12 = arith.constant 12 : index
    %c0_34 = arith.constant 0 : index
    %164 = vector.load %arg11[%c12, %c0_34] : memref<16x64xf32, #tpu.memory_space<vmem>>, vector<2x64xf32>
    tpu.vector_store %arg11[%c12, %c0_34], %163 {strides = array<i32>} : memref<16x64xf32, #tpu.memory_space<vmem>>, vector<2x64xf32>,
    %165 = vector.extract_strided_slice %5 {offsets = [14, 0], sizes = [2, 256], strides = [1, 1]} : vector<16x256xf32> to vector<2x256xf32>
    %cst_35 = arith.constant dense<0.000000e+00> : vector<2x256xf32>
    %166 = tpu.matmul %163, %6, %cst_35 {dimension_numbers = #tpu.dot_dimension_numbers<[1], [0], [0], [1], [0, 0, 1, 1], [], []>} : vector<2x64xf32>, vector<64x256xf32>, vector<2x256xf32> -> vector<2x256xf32>
    %167 = arith.addf %165, %166 : vector<2x256xf32>
    %168 = arith.negf %167 : vector<2x256xf32>
    %169 = math.exp %168 : vector<2x256xf32>
    %cst_36 = arith.constant 1.000000e+00 : f32
    %170 = vector.broadcast %cst_36 : f32 to vector<2x256xf32>
    %171 = arith.addf %170, %169 : vector<2x256xf32>
    %172 = arith.divf %170, %171 : vector<2x256xf32>
    %173 = math.tanh %167 : vector<2x256xf32>
    %174 = vector.extract_strided_slice %172 {offsets = [0, 0], sizes = [2, 64], strides = [1, 1]} : vector<2x256xf32> to vector<2x64xf32>
    %175 = vector.extract_strided_slice %172 {offsets = [0, 64], sizes = [2, 64], strides = [1, 1]} : vector<2x256xf32> to vector<2x64xf32>
    %176 = vector.extract_strided_slice %173 {offsets = [0, 128], sizes = [2, 64], strides = [1, 1]} : vector<2x256xf32> to vector<2x64xf32>
    %177 = vector.extract_strided_slice %172 {offsets = [0, 192], sizes = [2, 64], strides = [1, 1]} : vector<2x256xf32> to vector<2x64xf32>
    %178 = arith.mulf %175, %161 : vector<2x64xf32>
    %179 = arith.mulf %174, %176 : vector<2x64xf32>
    %180 = arith.addf %178, %179 : vector<2x64xf32>
    %181 = math.tanh %180 : vector<2x64xf32>
    %182 = arith.mulf %177, %181 : vector<2x64xf32>
    %183 = arith.select %11, %161, %180 : vector<2x64xi1>, vector<2x64xf32>
    %184 = arith.select %11, %163, %182 : vector<2x64xi1>, vector<2x64xf32>
    %c14 = arith.constant 14 : index
    %c0_37 = arith.constant 0 : index
    %185 = vector.load %arg11[%c14, %c0_37] : memref<16x64xf32, #tpu.memory_space<vmem>>, vector<2x64xf32>
    tpu.vector_store %arg11[%c14, %c0_37], %184 {strides = array<i32>} : memref<16x64xf32, #tpu.memory_space<vmem>>, vector<2x64xf32>,
    %c0_38 = arith.constant 0 : index
    %c0_39 = arith.constant 0 : index
    %186 = vector.load %arg9[%c0_38, %c0_39] : memref<2x64xf32, #tpu.memory_space<vmem>>, vector<2x64xf32>
    tpu.vector_store %arg9[%c0_38, %c0_39], %184 {strides = array<i32>} : memref<2x64xf32, #tpu.memory_space<vmem>>, vector<2x64xf32>,
    %c0_40 = arith.constant 0 : index
    %c0_41 = arith.constant 0 : index
    %187 = vector.load %arg10[%c0_40, %c0_41] : memref<2x64xf32, #tpu.memory_space<vmem>>, vector<2x64xf32>
    tpu.vector_store %arg10[%c0_40, %c0_41], %183 {strides = array<i32>} : memref<2x64xf32, #tpu.memory_space<vmem>>, vector<2x64xf32>,
    %c0_42 = arith.constant 0 : index
    %c0_43 = arith.constant 0 : index
    %188 = vector.load %arg11[%c0_42, %c0_43] : memref<16x64xf32, #tpu.memory_space<vmem>>, vector<16x64xf32>
    %c0_44 = arith.constant 0 : index
    %c0_45 = arith.constant 0 : index
    %189 = vector.load %arg4[%c0_44, %c0_45] : memref<64x32xf32, #tpu.memory_space<vmem>>, vector<64x32xf32>
    %cst_46 = arith.constant dense<0.000000e+00> : vector<16x32xf32>
    %190 = tpu.matmul %188, %189, %cst_46 {dimension_numbers = #tpu.dot_dimension_numbers<[1], [0], [0], [1], [0, 0, 1, 1], [], []>} : vector<16x64xf32>, vector<64x32xf32>, vector<16x32xf32> -> vector<16x32xf32>
    %c0_47 = arith.constant 0 : index
    %c0_48 = arith.constant 0 : index
    %191 = vector.load %arg5[%c0_47, %c0_48] : memref<1x32xf32, #tpu.memory_space<vmem>>, vector<1x32xf32>
    %192 = vector.broadcast %191 : vector<1x32xf32> to vector<16x32xf32>
    %193 = arith.addf %190, %192 : vector<16x32xf32>
    %c0_49 = arith.constant 0 : index
    %c0_50 = arith.constant 0 : index
    %194 = vector.load %arg8[%c0_49, %c0_50] : memref<16x32xf32, #tpu.memory_space<vmem>>, vector<16x32xf32>
    tpu.vector_store %arg8[%c0_49, %c0_50], %193 {strides = array<i32>} : memref<16x32xf32, #tpu.memory_space<vmem>>, vector<16x32xf32>,
    return
  }
}

</mosaic_0001>

<bundles_post_ra>
// kernel: eq.1
= control target key start
LH: loop header
LB: loop body
LE: loop exit
PB: predicated region body
PF: predicated region fallthrough
CT: control target
= control target key end

     0   :  { %s67_s10 = smov 14   ;;  %s68_s11 = smov 10   ;;  %vm3_vm0 = vcmask 15360   ;;  %vm9_vm1 = vcmask 130160   ;;  %vm15_vm2 = vcmask 113760   ;;  %vm21_vm3 = vcmask 97360   ;;  %s111_s0 = inlined_call_operand.vmem [shape: s32[8,2], index: 0, kind: input, shape index: {}]   ;;  %s112_s1 = inlined_call_operand.vmem [shape: s32[16], index: 1, kind: output, shape index: {}]  }
   0x1   :  { %v53_v0 = vld [vmem:[%s111_s0 + $0x7] sm:$0x1]   ;;  %v55_v1 = vld [vmem:[%s111_s0 + $0x5] sm:$0x1]   ;;  %v57_v2 = vld [vmem:[%s111_s0 + $0x3] sm:$0x1]  }
   0x2   :  { %7 = vrot.lane.b32.xlu0 %v53_v0, %s67_s10  ;;  %19 = vrot.lane.b32.xlu1 %v55_v1, %s68_s11  ;;  %s69_s14 = smov 6   ;;  %v54_v3 = vld [vmem:[%s111_s0 + $0x6] sm:$0x1]   ;;  %v56_v4 = vld [vmem:[%s111_s0 + $0x4] sm:$0x1]   ;;  %s70_s21 = smov 12  }
   0x3   :  { %31 = vrot.lane.b32.xlu2 %v57_v2, %s69_s14  ;;  %v58_v5 = vld [vmem:[%s111_s0 + $0x2] sm:$0x1]   ;;  %s71_s22 = smov 8   ;;  %s72_s23 = smov 4   ;;  %v59_v6 = vld [vmem:[%s111_s0 + $0x1] sm:$0x1]  }
   0x4   :  { %s73_s26 = smov 2   ;;  %v2_v7 = vld [vmem:[%s111_s0] sm:$0x1]   ;;  %vm27_vm4 = vcmask 80960   ;;  %vm33_vm5 = vcmask 64560   ;;  %vm39_vm6 = vcmask 48160  }
   0x5   :  { %4 = vst.msk [vmem:[#allocation0] sm:$0x1] %vm3_vm0, %v2_v7   ;;  %vm45_vm7 = vcmask 31760  }
   0xa   :  { %13 = vrot.lane.b32.xlu0 %v54_v3, %s70_s21  ;;  %25 = vrot.lane.b32.xlu1 %v56_v4, %s71_s22 }
   0xb   :  { %37 = vrot.lane.b32.xlu2 %v58_v5, %s72_s23 }
  0x12   :  { %43 = vrot.lane.b32.xlu0 %v59_v6, %s73_s26 }
  0x5d   :  { %v32_v8 = vpop.permute.xlu2 %31  }
  0x65   :  { %v38_v9 = vpop.permute.xlu2 %37  }
  0x74   :  { %v8_v10 = vpop.permute.xlu0 %7   ;;  %v20_v11 = vpop.permute.xlu1 %19  }
  0x75   :  { %10 = vst.msk [vmem:[#allocation0] sm:$0x1] %vm9_vm1, %v8_v10  }
  0x7c   :  { %v14_v12 = vpop.permute.xlu0 %13   ;;  %v26_v13 = vpop.permute.xlu1 %25  }
  0x7d   :  { %16 = vst.msk [vmem:[#allocation0] sm:$0x1] %vm15_vm2, %v14_v12  }
  0x7e   :  { %22 = vst.msk [vmem:[#allocation0] sm:$0x1] %vm21_vm3, %v20_v11  }
  0x7f   :  { %28 = vst.msk [vmem:[#allocation0] sm:$0x1] %vm27_vm4, %v26_v13  }
  0x80   :  { %34 = vst.msk [vmem:[#allocation0] sm:$0x1] %vm33_vm5, %v32_v8  }
  0x81   :  { %40 = vst.msk [vmem:[#allocation0] sm:$0x1] %vm39_vm6, %v38_v9  }
  0x84   :  { %v44_v14 = vpop.permute.xlu0 %43  }
  0x85   :  { %46 = vst.msk [vmem:[#allocation0] sm:$0x1] %vm45_vm7, %v44_v14  }
  0x8c   :  { %v49_v15 = vld [vmem:[#allocation0] sm:$0x1] }
  0x8d   :  { %52 = vst [vmem:[%s112_s1] sm:$0x1] %v49_v15 }

// kernel: music_rnn_forward.1
= control target key start
LH: loop header
LB: loop body
LE: loop exit
PB: predicated region body
PF: predicated region fallthrough
CT: control target
= control target key end

     0   :  { %16 = vsyncpa [#allocation4], 0  ;;  %s1365_s16 = smov [#allocation3]   ;;  %s1366_s18 = smov 256   ;;  %s1849_s0 = inlined_call_operand.vmem [shape: f32[16,32], index: 0, kind: input, shape index: {}]   ;;  %s1850_s1 = inlined_call_operand.vmem [shape: f32[32,256], index: 1, kind: input, shape index: {}]   ;;  %s1851_s2 = inlined_call_operand.vmem [shape: f32[1,256], index: 2, kind: input, shape index: {}]   ;;  %s1852_s3 = inlined_call_operand.hbm [shape: f32[64,256], index: 3, kind: input, shape index: {}]   ;;  %s1853_s4 = inlined_call_operand.vmem [shape: f32[64,32], index: 4, kind: input, shape index: {}]   ;;  %s1854_s5 = inlined_call_operand.vmem [shape: f32[1,32], index: 5, kind: input, shape index: {}]   ;;  %s1855_s6 = inlined_call_operand.vmem [shape: f32[2,64], index: 6, kind: input, shape index: {}, may-alias: {6,7}]   ;;  %s1856_s7 = inlined_call_operand.vmem [shape: f32[2,64], index: 7, kind: input, shape index: {}, may-alias: {6,7}]   ;;  %s1857_s8 = inlined_call_operand.vmem [shape: f32[16,32], index: 8, kind: output, shape index: {0}]   ;;  %s1858_s9 = inlined_call_operand.vmem [shape: f32[2,64], index: 9, kind: output, shape index: {1}]   ;;  %s1859_s10 = inlined_call_operand.vmem [shape: f32[2,64], index: 10, kind: output, shape index: {2}]  }
   0x1   :  { %s27_s15 = sshll.u32 %s1852_s3, 4  ;;  %s29_s17 = sshll.u32 %s1365_s16, 4  ;;  %s28_s15 = int_to_ptr.hbm [resolvable:$true] %s27_s15  ;;  %s30_s17 = int_to_ptr.vmem [resolvable:$true] %s29_s17 }
   0x2   :  { %s1367_s19 = smov 16  }
   0x3   :  { %35 = dma.hbm_to_vmem [thread:$0]  %s28_s15, 2048, %s30_s17, [#allocation4], %s1366_s18, %s1366_s18, %s1367_s19  }
   0x4   :  { %1363 = dma.done.wait [#allocation4], 2048  }
   0x5   :  { %1364 = vsyncadd [#allocation4], 4294965248  ;;  %v1427_v0 = vld [vmem:[#allocation3 + $0x70] sm:$0xff]  ;;  %v1429_v1 = vld [vmem:[#allocation3 + $0x60] sm:$0xff]  ;;  %vm64_vm0 = vcmask 261120   ;;  %s1368_s17 = smov 64  }
   0x6   :  { %v56_v2 = vld [vmem:[%s1850_s1 + $0x30] sm:$0xff]  ;;  %150 = vmatpush.msra.mxu2 %v1427_v0  ;;  %v54_v3 = vld [vmem:[%s1850_s1 + $0x20] sm:$0xff]  ;;  %v1443_v6 = vld [vmem:[#allocation3 + $0x78] sm:$0xff]  ;;  %257 = vmatpush.msra.mxu0 %v1427_v0  ;;  %vm138_vm1 = vcmask 523264  }
   0x7   :  { %83 = vmatpush.msra.mxu1 %v56_v2  ;;  %v1438_v4 = vld [vmem:[#allocation3 + $0x50] sm:$0xff]  ;;  %v52_v5 = vld [vmem:[%s1850_s1 + $0x10] sm:$0xff]  ;;  %v1447_v7 = vld [vmem:[#allocation3 + $0x68] sm:$0xff]  ;;  %170 = vmatpush.msra.mxu3 %v1443_v6 }
   0x8   :  { %151 = vmatpush.msra.mxu2 %v1429_v1  ;;  %v1449_v8 = vld [vmem:[#allocation3 + $0x40] sm:$0xff]  ;;  %v50_v9 = vld [vmem:[%s1850_s1] sm:$0xff]  ;;  %258 = vmatpush.msra.mxu0 %v1429_v1  ;;  %v1460_v11 = vld [vmem:[#allocation3 + $0x58] sm:$0xff] }
   0x9   :  { %84 = vmatpush.msra.mxu1 %v54_v3  ;;  %v48_v10 = vld [vmem:[%s1849_s0] sm:$0xff]  ;;  %171 = vmatpush.msra.mxu3 %v1447_v7  ;;  %v1467_v13 = vld [vmem:[#allocation3 + $0x48] sm:$0xff]  ;;  %v1472_v15 = vld [vmem:[#allocation3 + $0x20] sm:$0xff] }
   0xa   :  { %152 = vmatpush.msra.mxu2 %v1438_v4  ;;  %v1462_v12 = vld [vmem:[#allocation3 + $0x30] sm:$0xff]  ;;  %259 = vmatpush.msra.mxu0 %v1438_v4  ;;  %v57_v14 = vld [vmem:[%s1850_s1 + $0x38] sm:$0xff]  ;;  %v55_v16 = vld [vmem:[%s1850_s1 + $0x28] sm:$0xff] }
   0xb   :  { %85 = vmatpush.msra.mxu1 %v52_v5  ;;  %172 = vmatpush.msra.mxu3 %v1460_v11  ;;  %v1480_v17 = vld [vmem:[#allocation3 + $0x38] sm:$0xff]  ;;  %v1485_v18 = vld [vmem:[%s1856_s7] sm:$0x3]  ;;  %v53_v20 = vld [vmem:[%s1850_s1 + $0x18] sm:$0xff] }
   0xc   :  { %153 = vmatpush.msra.mxu2 %v1449_v8  ;;  %v1487_v19 = vld [vmem:[#allocation3 + $0x10] sm:$0xff]  ;;  %224 = vrot.lane.b32.xlu0 %v1485_v18, %s1368_s17  ;;  %v1496_v21 = vld [vmem:[#allocation3 + $0x28] sm:$0xff]  ;;  %v1498_v22 = vld [vmem:[#allocation3] sm:$0xff] }
   0xd   :  { %86 = vmatpush.msra.mxu1 %v50_v9  ;;  %173 = vmatpush.msra.mxu3 %v1467_v13  ;;  %v51_v23 = vld [vmem:[%s1850_s1 + $0x8] sm:$0xff]  ;;  %v1509_v24 = vld [vmem:[%s1855_s6] sm:$0x3]  ;;  %v1522_v27 = vld [vmem:[#allocation3 + $0x8] sm:$0xff] }
   0xe   :  { %1184 = vmatmul.msk.f32.vlgmr.msra.gmra.mxu1 %vm64_vm0, %v48_v10  ;;  %154 = vmatpush.msra.mxu2 %v1462_v12  ;;  %v49_v25 = vld [vmem:[%s1849_s0 + $0x8] sm:$0xff]  ;;  %v1592_v29 = vld [vmem:[%s1851_s2] sm:$0x3] }
   0xf   :  { %106 = vmatpush.msrb.mxu1 %v57_v14  ;;  %174 = vmatpush.msra.mxu3 %v1480_v17  ;;  %v1515_v26 = vld [vmem:[#allocation3 + $0x18] sm:$0xff]  ;;  %v60_v30 = vperm.slane %v1592_v29, 0  ;;  %v61_v39 = vperm.slane %v1592_v29, 1 }
  0x10   :  { %155 = vmatpush.msra.mxu2 %v1472_v15  ;;  %260 = vmatpush.msra.mxu0 %v1449_v8 }
  0x11   :  { %107 = vmatpush.msrb.mxu1 %v55_v16  ;;  %175 = vmatpush.msra.mxu3 %v1496_v21 }
  0x12   :  { %156 = vmatpush.msra.mxu2 %v1487_v19  ;;  %261 = vmatpush.msra.mxu0 %v1462_v12 }
  0x13   :  { %108 = vmatpush.msrb.mxu1 %v53_v20  ;;  %176 = vmatpush.msra.mxu3 %v1515_v26 }
  0x14   :  { %157 = vmatpush.msra.mxu2 %v1498_v22  ;;  %262 = vmatpush.msra.mxu0 %v1472_v15 }
  0x15   :  { %109 = vmatpush.msrb.mxu1 %v51_v23  ;;  %1188 = vmatmul.msk.f32.vlgmr.msra.gmra.mxu2 %vm138_vm1, %v1509_v24 }
  0x16   :  { %1185 = vmatmul.msk.f32.gmra.mxu1 %vm64_vm0, %v49_v25  ;;  %369 = vmatpush.msrb.mxu2 %v1427_v0 }
  0x17   :  { %277 = vmatpush.msra.mxu1 %v1443_v6  ;;  %177 = vmatpush.msra.mxu3 %v1522_v27 }
  0x18   :  { %1189 = vmatmul.msk.f32.vlgmr.msra.gmra.mxu3 %vm138_vm1, %v1509_v24  ;;  %263 = vmatpush.msra.mxu0 %v1487_v19 }
  0x19   :  { %278 = vmatpush.msra.mxu1 %v1447_v7  ;;  %389 = vmatpush.msrb.mxu3 %v1443_v6 }
  0x1a   :  { %264 = vmatpush.msra.mxu0 %v1498_v22  ;;  %370 = vmatpush.msrb.mxu2 %v1429_v1 }
  0x1b   :  { %279 = vmatpush.msra.mxu1 %v1460_v11  ;;  %390 = vmatpush.msrb.mxu3 %v1447_v7 }
  0x1c   :  { %371 = vmatpush.msrb.mxu2 %v1438_v4  ;;  %479 = vmatpush.msrb.mxu0 %v1427_v0 }
  0x1d   :  { %280 = vmatpush.msra.mxu1 %v1467_v13  ;;  %391 = vmatpush.msrb.mxu3 %v1460_v11 }
  0x1e   :  { %1186 = vmatmul.msk.f32.vlgmr.msrb.gmra.mxu1 %vm64_vm0, %v48_v10  ;;  %372 = vmatpush.msrb.mxu2 %v1449_v8 }
  0x1f   :  { %281 = vmatpush.msra.mxu1 %v1480_v17  ;;  %392 = vmatpush.msrb.mxu3 %v1467_v13 }
  0x20   :  { %373 = vmatpush.msrb.mxu2 %v1462_v12  ;;  %480 = vmatpush.msrb.mxu0 %v1429_v1 }
  0x21   :  { %282 = vmatpush.msra.mxu1 %v1496_v21  ;;  %393 = vmatpush.msrb.mxu3 %v1480_v17 }
  0x22   :  { %374 = vmatpush.msrb.mxu2 %v1472_v15  ;;  %481 = vmatpush.msrb.mxu0 %v1438_v4 }
  0x23   :  { %283 = vmatpush.msra.mxu1 %v1515_v26  ;;  %394 = vmatpush.msrb.mxu3 %v1496_v21 }
  0x24   :  { %375 = vmatpush.msrb.mxu2 %v1487_v19  ;;  %482 = vmatpush.msrb.mxu0 %v1449_v8 }
  0x25   :  { %284 = vmatpush.msra.mxu1 %v1522_v27  ;;  %395 = vmatpush.msrb.mxu3 %v1515_v26 }
  0x26   :  { %1187 = vmatmul.msk.f32.gmra.mxu1 %vm64_vm0, %v49_v25  ;;  %376 = vmatpush.msrb.mxu2 %v1498_v22 }
  0x27   :  { %499 = vmatpush.msrb.mxu1 %v1443_v6  ;;  %396 = vmatpush.msrb.mxu3 %v1522_v27 }
  0x28   :  { %483 = vmatpush.msrb.mxu0 %v1462_v12  ;;  %589 = vmatpush.msra.mxu2 %v1427_v0 }
  0x29   :  { %500 = vmatpush.msrb.mxu1 %v1447_v7  ;;  %609 = vmatpush.msra.mxu3 %v1443_v6 }
  0x2a   :  { %484 = vmatpush.msrb.mxu0 %v1472_v15  ;;  %590 = vmatpush.msra.mxu2 %v1429_v1 }
  0x2b   :  { %501 = vmatpush.msrb.mxu1 %v1460_v11  ;;  %610 = vmatpush.msra.mxu3 %v1447_v7 }
  0x2c   :  { %485 = vmatpush.msrb.mxu0 %v1487_v19  ;;  %591 = vmatpush.msra.mxu2 %v1438_v4 }
  0x2d   :  { %502 = vmatpush.msrb.mxu1 %v1467_v13  ;;  %611 = vmatpush.msra.mxu3 %v1460_v11 }
  0x2e   :  { %486 = vmatpush.msrb.mxu0 %v1498_v22  ;;  %592 = vmatpush.msra.mxu2 %v1449_v8 }
  0x2f   :  { %503 = vmatpush.msrb.mxu1 %v1480_v17  ;;  %612 = vmatpush.msra.mxu3 %v1467_v13 }
  0x30   :  { %593 = vmatpush.msra.mxu2 %v1462_v12 }
  0x31   :  { %504 = vmatpush.msrb.mxu1 %v1496_v21  ;;  %613 = vmatpush.msra.mxu3 %v1480_v17 }
  0x32   :  { %594 = vmatpush.msra.mxu2 %v1472_v15 }
  0x33   :  { %505 = vmatpush.msrb.mxu1 %v1515_v26  ;;  %614 = vmatpush.msra.mxu3 %v1496_v21 }
  0x34   :  { %595 = vmatpush.msra.mxu2 %v1487_v19 }
  0x35   :  { %506 = vmatpush.msrb.mxu1 %v1522_v27  ;;  %615 = vmatpush.msra.mxu3 %v1515_v26 }
  0x36   :  { %596 = vmatpush.msra.mxu2 %v1498_v22 }
  0x37   :  { %616 = vmatpush.msra.mxu3 %v1522_v27 }
  0x7e   :  { %v225_v61 = vpop.permute.xlu0 %224 }
  0x8b   :  { %v88_v28 = vpop.f32.mrf.mxu1 }
  0x8c   :  { %v1597_v33 = vadd.f32 %v88_v28, %v60_v30 }
  0x93   :  { %v91_v31 = vpop.f32.mrf.mxu1 }
  0x94   :  { %v1595_v32 = vadd.f32 %v91_v31, %v60_v30  ;;  %v135_v30 = vlaneseq }
  0x96   :  { %v1609_v31 = vand.u32 127, %v135_v30 }
  0x98   :  { %v159_v34 = vpop.f32.mrf.mxu2  ;;  %vm137_vm10 = vcmp.lt.s32.totalorder %v1609_v31, 32 }
  0x99   :  { %v182_v35 = vadd.f32 %v159_v34, %v1597_v33 }
  0x9b   :  { %v1190_v36 = vmul.f32 -1.442695, %v182_v35  ;;  %v111_v40 = vpop.f32.mrf.mxu1  ;;  %v179_v42 = vpop.f32.mrf.mxu3 }
  0x9c   :  { %v1603_v41 = vadd.f32 %v111_v40, %v61_v39 }
  0x9d   :  { %1231 = vpow2.f32 %v1190_v36 }
  0x9e   :  { %v183_v44 = vadd.f32 %v179_v42, %v1603_v41 }
  0xa0   :  { %v1191_v56 = vmul.f32 -1.442695, %v183_v44 }
  0xa3   :  { %v1232_v37 = vpop.eup %1231  ;;  %v1638_v42 = vpop.f32.mrf.mxu1 }
  0xa4   :  { %v190_v38 = vadd.f32 1.0, %v1232_v37 }
  0xa6   :  { %1233 = vrcp.f32 %v190_v38  ;;  %v203_v47 = vand.u32 2147483648, %v190_v38  ;;  %v201_v49 = vand.u32 2147483647, %v190_v38  ;;  %vm197_vm3 = vweird.f32 %v190_v38 }
  0xa7   :  { %1235 = vtanh.f32 %v183_v44 }
  0xa8   :  { %v204_v52 = vor.u32 1.1754944e-38, %v203_v47  ;;  %vm202_vm5 = vcmp.eq.f32.partialorder %v201_v49, 8.507059e+37  ;;  %1237 = vpow2.f32 %v1191_v56 }
  0xac   :  { %v1234_v43 = vpop.eup %1233 }
  0xad   :  { %v193_v45 = vmul.f32 %v1234_v43, %v190_v38  ;;  %vm198_vm2 = vweird.f32 %v1234_v43  ;;  %v1236_v51 = vpop.eup %1235 }
  0xae   :  { %vm199_vm4 = vmor %vm197_vm3, %vm198_vm2  ;;  %v1238_v57 = vpop.eup %1237 }
  0xaf   :  { %v194_v46 = vsub.f32 1.0, %v193_v45  ;;  %v191_v58 = vadd.f32 1.0, %v1238_v57 }
  0xb1   :  { %v195_v48 = vmul.f32 %v1234_v43, %v194_v46  ;;  %1239 = vrcp.f32 %v191_v58  ;;  %vm212_vm6 = vweird.f32 %v191_v58  ;;  %v218_v9 = vand.u32 2147483648, %v191_v58 }
  0xb2   :  { %v216_v14 = vand.u32 2147483647, %v191_v58 }
  0xb3   :  { %v196_v50 = vadd.f32 %v1234_v43, %v195_v48  ;;  %v219_v16 = vor.u32 1.1754944e-38, %v218_v9 }
  0xb4   :  { %vm217_vm9 = vcmp.eq.f32.partialorder %v216_v14, 8.507059e+37 }
  0xb5   :  { %v200_v53 = vsel %vm199_vm4, %v1234_v43, %v196_v50 }
  0xb6   :  { %v205_v54 = vsel %vm202_vm5, %v204_v52, %v200_v53 }
  0xb7   :  { %v228_v55 = vmul.f32 %v1236_v51, %v205_v54  ;;  %v1240_v59 = vpop.eup %1239  ;;  %v227_v2 = vmul.f32 %v225_v61, %v205_v54 }
  0xb8   :  { %v208_v60 = vmul.f32 %v1240_v59, %v191_v58  ;;  %vm213_vm7 = vweird.f32 %v1240_v59 }
  0xb9   :  { %230 = vrot.lane.b32.xlu0 %v228_v55, %s1368_s17  ;;  %vm214_vm8 = vmor %vm212_vm6, %vm213_vm7 }
  0xba   :  { %v209_v62 = vsub.f32 1.0, %v208_v60 }
  0xbc   :  { %v210_v63 = vmul.f32 %v1240_v59, %v209_v62 }
  0xbe   :  { %v211_v10 = vadd.f32 %v1240_v59, %v210_v63 }
  0xc0   :  { %v215_v20 = vsel %vm214_vm8, %v1240_v59, %v211_v10 }
  0xc1   :  { %v220_v25 = vsel %vm217_vm9, %v219_v16, %v215_v20 }
 0x12b   :  { %v231_v3 = vpop.permute.xlu0 %230 }
 0x12c   :  { %v233_v5 = vadd.f32 %v231_v3, %v227_v2 }
 0x12e   :  { %1241 = vtanh.f32 %v233_v5 }
 0x134   :  { %v1242_v23 = vpop.eup %1241 }
 0x135   :  { %v235_v28 = vmul.f32 %v1242_v23, %v220_v25 }
 0x137   :  { %242 = vrot.lane.b32.xlu1 %v235_v28, %s1368_s17 }
 0x13f   :  { %237 = vrot.lane.b32.xlu1 %v233_v5, %s1368_s17 }
 0x1a9   :  { %v243_v34 = vpop.permute.xlu1 %242 }
 0x1aa   :  { %v245_v35 = vsel %vm137_vm10, %v243_v34, %v1509_v24 }
 0x1ab   :  { %1192 = vmatmul.msk.f32.vlgmr.msra.gmra.mxu0 %vm138_vm1, %v245_v35  ;;  %1193 = vmatmul.msk.f32.vlgmr.msra.gmra.mxu1 %vm138_vm1, %v245_v35 }
 0x1ac   :  { %690 = vmatpush.msra.mxu0 %v1427_v0  ;;  %710 = vmatpush.msra.mxu1 %v1443_v6 }
 0x1ae   :  { %691 = vmatpush.msra.mxu0 %v1429_v1  ;;  %711 = vmatpush.msra.mxu1 %v1447_v7 }
 0x1b0   :  { %692 = vmatpush.msra.mxu0 %v1438_v4  ;;  %712 = vmatpush.msra.mxu1 %v1460_v11 }
 0x1b1   :  { %v238_v36 = vpop.permute.xlu1 %237 }
 0x1b2   :  { %v240_v24 = vsel %vm137_vm10, %v238_v36, %v1485_v18  ;;  %693 = vmatpush.msra.mxu0 %v1449_v8  ;;  %713 = vmatpush.msra.mxu1 %v1467_v13 }
 0x1b3   :  { %v337_v37 = vrot.slane %v240_v24, 6 }
 0x1b4   :  { %694 = vmatpush.msra.mxu0 %v1462_v12  ;;  %714 = vmatpush.msra.mxu1 %v1480_v17 }
 0x1b5   :  { %338 = vrot.lane.b32.xlu2 %v337_v37, %s1368_s17 }
 0x1b6   :  { %695 = vmatpush.msra.mxu0 %v1472_v15  ;;  %715 = vmatpush.msra.mxu1 %v1496_v21 }
 0x1b8   :  { %696 = vmatpush.msra.mxu0 %v1487_v19  ;;  %716 = vmatpush.msra.mxu1 %v1515_v26 }
 0x1ba   :  { %697 = vmatpush.msra.mxu0 %v1498_v22  ;;  %717 = vmatpush.msra.mxu1 %v1522_v27 }
 0x20f   :  { %v339_v5 = vpop.permute.xlu2 %338 }
 0x228   :  { %v266_v18 = vpop.f32.mrf.mxu0  ;;  %v286_v46 = vpop.f32.mrf.mxu1 }
 0x229   :  { %v291_v38 = vrot.slane %v266_v18, 6  ;;  %v292_v47 = vrot.slane %v286_v46, 6 }
 0x22b   :  { %v295_v40 = vadd.f32 %v291_v38, %v1597_v33  ;;  %v296_v49 = vadd.f32 %v292_v47, %v1603_v41 }
 0x22d   :  { %v1194_v43 = vmul.f32 -1.442695, %v295_v40  ;;  %v1195_v61 = vmul.f32 -1.442695, %v296_v49 }
 0x22f   :  { %1243 = vpow2.f32 %v1194_v43 }
 0x235   :  { %v1244_v44 = vpop.eup %1243 }
 0x236   :  { %v303_v45 = vadd.f32 1.0, %v1244_v44 }
 0x238   :  { %1245 = vrcp.f32 %v303_v45  ;;  %v316_v52 = vand.u32 2147483648, %v303_v45  ;;  %v314_v54 = vand.u32 2147483647, %v303_v45  ;;  %vm310_vm12 = vweird.f32 %v303_v45 }
 0x239   :  { %1247 = vtanh.f32 %v296_v49 }
 0x23a   :  { %v317_v56 = vor.u32 1.1754944e-38, %v316_v52  ;;  %vm315_vm14 = vcmp.eq.f32.partialorder %v314_v54, 8.507059e+37  ;;  %1249 = vpow2.f32 %v1195_v61 }
 0x23e   :  { %v1246_v48 = vpop.eup %1245 }
 0x23f   :  { %v306_v50 = vmul.f32 %v1246_v48, %v303_v45  ;;  %vm311_vm11 = vweird.f32 %v1246_v48  ;;  %v1248_v58 = vpop.eup %1247 }
 0x240   :  { %vm312_vm13 = vmor %vm310_vm12, %vm311_vm11  ;;  %v1250_v62 = vpop.eup %1249 }
 0x241   :  { %v307_v51 = vsub.f32 1.0, %v306_v50  ;;  %v304_v63 = vadd.f32 1.0, %v1250_v62 }
 0x243   :  { %v308_v53 = vmul.f32 %v1246_v48, %v307_v51  ;;  %1251 = vrcp.f32 %v304_v63  ;;  %v331_v25 = vand.u32 2147483648, %v304_v63  ;;  %vm325_vm2 = vweird.f32 %v304_v63 }
 0x244   :  { %v329_v28 = vand.u32 2147483647, %v304_v63 }
 0x245   :  { %v309_v55 = vadd.f32 %v1246_v48, %v308_v53  ;;  %v332_v34 = vor.u32 1.1754944e-38, %v331_v25 }
 0x246   :  { %vm330_vm4 = vcmp.eq.f32.partialorder %v329_v28, 8.507059e+37 }
 0x247   :  { %v313_v57 = vsel %vm312_vm13, %v1246_v48, %v309_v55 }
 0x248   :  { %v318_v59 = vsel %vm315_vm14, %v317_v56, %v313_v57 }
 0x249   :  { %v342_v60 = vmul.f32 %v1248_v58, %v318_v59  ;;  %v1252_v2 = vpop.eup %1251  ;;  %v341_v14 = vmul.f32 %v339_v5, %v318_v59 }
 0x24a   :  { %v321_v3 = vmul.f32 %v1252_v2, %v304_v63  ;;  %vm326_vm15 = vweird.f32 %v1252_v2 }
 0x24b   :  { %344 = vrot.lane.b32.xlu2 %v342_v60, %s1368_s17  ;;  %vm327_vm3 = vmor %vm325_vm2, %vm326_vm15 }
 0x24c   :  { %v322_v9 = vsub.f32 1.0, %v321_v3 }
 0x24e   :  { %v323_v10 = vmul.f32 %v1252_v2, %v322_v9 }
 0x250   :  { %v324_v23 = vadd.f32 %v1252_v2, %v323_v10 }
 0x252   :  { %v328_v30 = vsel %vm327_vm3, %v1252_v2, %v324_v23 }
 0x253   :  { %v333_v36 = vsel %vm330_vm4, %v332_v34, %v328_v30 }
 0x2a5   :  { %v345_v16 = vpop.permute.xlu2 %344 }
 0x2a6   :  { %v1642_v20 = vadd.f32 %v345_v16, %v341_v14 }
 0x2a8   :  { %1253 = vtanh.f32 %v1642_v20  ;;  %v449_v58 = vrot.slane %v1642_v20, 6 }
 0x2ae   :  { %v1254_v35 = vpop.eup %1253 }
 0x2af   :  { %v1645_v24 = vmul.f32 %v1254_v35, %v333_v36 }
 0x2b1   :  { %v356_v37 = vrot.slane %v1645_v24, 2 }
 0x2b3   :  { %357 = vrot.lane.b32.xlu0 %v356_v37, %s1368_s17 }
 0x325   :  { %v358_v18 = vpop.permute.xlu0 %357 }
 0x326   :  { %1196 = vmatmul.msk.f32.vlgmr.msrb.gmra.mxu2 %vm138_vm1, %v358_v18  ;;  %1197 = vmatmul.msk.f32.vlgmr.msrb.gmra.mxu3 %vm138_vm1, %v358_v18 }
 0x327   :  { %799 = vmatpush.msrb.mxu2 %v1427_v0  ;;  %819 = vmatpush.msrb.mxu3 %v1443_v6 }
 0x329   :  { %800 = vmatpush.msrb.mxu2 %v1429_v1  ;;  %820 = vmatpush.msrb.mxu3 %v1447_v7 }
 0x32b   :  { %801 = vmatpush.msrb.mxu2 %v1438_v4  ;;  %821 = vmatpush.msrb.mxu3 %v1460_v11 }
 0x32d   :  { %802 = vmatpush.msrb.mxu2 %v1449_v8  ;;  %822 = vmatpush.msrb.mxu3 %v1467_v13 }
 0x32f   :  { %803 = vmatpush.msrb.mxu2 %v1462_v12  ;;  %823 = vmatpush.msrb.mxu3 %v1480_v17 }
 0x331   :  { %804 = vmatpush.msrb.mxu2 %v1472_v15  ;;  %824 = vmatpush.msrb.mxu3 %v1496_v21 }
 0x333   :  { %805 = vmatpush.msrb.mxu2 %v1487_v19  ;;  %825 = vmatpush.msrb.mxu3 %v1515_v26 }
 0x335   :  { %806 = vmatpush.msrb.mxu2 %v1498_v22  ;;  %826 = vmatpush.msrb.mxu3 %v1522_v27 }
 0x3a9   :  { %v378_v38 = vpop.f32.mrf.mxu2  ;;  %v398_v47 = vpop.f32.mrf.mxu3 }
 0x3aa   :  { %v403_v40 = vrot.slane %v378_v38, 4  ;;  %v404_v48 = vrot.slane %v398_v47, 4 }
 0x3ac   :  { %v407_v43 = vadd.f32 %v403_v40, %v1597_v33  ;;  %v408_v50 = vadd.f32 %v404_v48, %v1603_v41 }
 0x3ae   :  { %v1198_v44 = vmul.f32 -1.442695, %v407_v43  ;;  %v1199_v2 = vmul.f32 -1.442695, %v408_v50 }
 0x3b0   :  { %1255 = vpow2.f32 %v1198_v44 }
 0x3b6   :  { %v1256_v45 = vpop.eup %1255 }
 0x3b7   :  { %v415_v46 = vadd.f32 1.0, %v1256_v45 }
 0x3b9   :  { %1257 = vrcp.f32 %v415_v46  ;;  %v428_v53 = vand.u32 2147483648, %v415_v46  ;;  %v426_v55 = vand.u32 2147483647, %v415_v46  ;;  %vm422_vm6 = vweird.f32 %v415_v46 }
 0x3ba   :  { %1259 = vtanh.f32 %v408_v50 }
 0x3bb   :  { %v429_v57 = vor.u32 1.1754944e-38, %v428_v53  ;;  %vm427_vm8 = vcmp.eq.f32.partialorder %v426_v55, 8.507059e+37  ;;  %1261 = vpow2.f32 %v1199_v2 }
 0x3bf   :  { %v1258_v49 = vpop.eup %1257 }
 0x3c0   :  { %v418_v51 = vmul.f32 %v1258_v49, %v415_v46  ;;  %vm423_vm5 = vweird.f32 %v1258_v49  ;;  %v1260_v60 = vpop.eup %1259 }
 0x3c1   :  { %vm424_vm7 = vmor %vm422_vm6, %vm423_vm5  ;;  %v1262_v3 = vpop.eup %1261 }
 0x3c2   :  { %v419_v52 = vsub.f32 1.0, %v418_v51  ;;  %v416_v5 = vadd.f32 1.0, %v1262_v3 }
 0x3c4   :  { %v420_v54 = vmul.f32 %v1258_v49, %v419_v52  ;;  %1263 = vrcp.f32 %v416_v5  ;;  %v443_v28 = vand.u32 2147483648, %v416_v5  ;;  %vm437_vm11 = vweird.f32 %v416_v5 }
 0x3c5   :  { %v441_v30 = vand.u32 2147483647, %v416_v5 }
 0x3c6   :  { %v421_v56 = vadd.f32 %v1258_v49, %v420_v54  ;;  %v444_v35 = vor.u32 1.1754944e-38, %v443_v28 }
 0x3c7   :  { %vm442_vm13 = vcmp.eq.f32.partialorder %v441_v30, 8.507059e+37 }
 0x3c8   :  { %v425_v59 = vsel %vm424_vm7, %v1258_v49, %v421_v56 }
 0x3c9   :  { %v430_v61 = vsel %vm427_vm8, %v429_v57, %v425_v59 }
 0x3ca   :  { %v452_v62 = vmul.f32 %v1260_v60, %v430_v61  ;;  %v451_v63 = vmul.f32 %v449_v58, %v430_v61  ;;  %v1264_v9 = vpop.eup %1263 }
 0x3cb   :  { %v433_v10 = vmul.f32 %v1264_v9, %v416_v5  ;;  %vm438_vm9 = vweird.f32 %v1264_v9 }
 0x3cc   :  { %454 = vrot.lane.b32.xlu1 %v452_v62, %s1368_s17  ;;  %vm439_vm12 = vmor %vm437_vm11, %vm438_vm9 }
 0x3cd   :  { %v434_v14 = vsub.f32 1.0, %v433_v10 }
 0x3cf   :  { %v435_v16 = vmul.f32 %v1264_v9, %v434_v14 }
 0x3d1   :  { %v436_v20 = vadd.f32 %v1264_v9, %v435_v16 }
 0x3d3   :  { %v440_v34 = vsel %vm439_vm12, %v1264_v9, %v436_v20 }
 0x3d4   :  { %v445_v37 = vsel %vm442_vm13, %v444_v35, %v440_v34 }
 0x43e   :  { %v455_v23 = vpop.permute.xlu1 %454 }
 0x43f   :  { %v1671_v25 = vadd.f32 %v455_v23, %v451_v63 }
 0x441   :  { %1265 = vtanh.f32 %v1671_v25  ;;  %v559_v59 = vrot.slane %v1671_v25, 6 }
 0x447   :  { %v1266_v36 = vpop.eup %1265 }
 0x448   :  { %v1674_v18 = vmul.f32 %v1266_v36, %v445_v37 }
 0x44a   :  { %v466_v38 = vrot.slane %v1674_v18, 4 }
 0x44c   :  { %467 = vrot.lane.b32.xlu2 %v466_v38, %s1368_s17 }
 0x4a6   :  { %v468_v40 = vpop.permute.xlu2 %467 }
 0x4a7   :  { %1200 = vmatmul.msk.f32.vlgmr.msrb.gmra.mxu0 %vm138_vm1, %v468_v40  ;;  %1201 = vmatmul.msk.f32.vlgmr.msrb.gmra.mxu1 %vm138_vm1, %v468_v40 }
 0x4a8   :  { %908 = vmatpush.msrb.mxu0 %v1427_v0  ;;  %928 = vmatpush.msrb.mxu1 %v1443_v6 }
 0x4aa   :  { %909 = vmatpush.msrb.mxu0 %v1429_v1  ;;  %929 = vmatpush.msrb.mxu1 %v1447_v7 }
 0x4ac   :  { %910 = vmatpush.msrb.mxu0 %v1438_v4  ;;  %930 = vmatpush.msrb.mxu1 %v1460_v11 }
 0x4ae   :  { %911 = vmatpush.msrb.mxu0 %v1449_v8  ;;  %931 = vmatpush.msrb.mxu1 %v1467_v13 }
 0x4b0   :  { %912 = vmatpush.msrb.mxu0 %v1462_v12  ;;  %932 = vmatpush.msrb.mxu1 %v1480_v17 }
 0x4b2   :  { %913 = vmatpush.msrb.mxu0 %v1472_v15  ;;  %933 = vmatpush.msrb.mxu1 %v1496_v21 }
 0x4b4   :  { %914 = vmatpush.msrb.mxu0 %v1487_v19  ;;  %934 = vmatpush.msrb.mxu1 %v1515_v26 }
 0x4b6   :  { %915 = vmatpush.msrb.mxu0 %v1498_v22  ;;  %935 = vmatpush.msrb.mxu1 %v1522_v27 }
 0x524   :  { %v488_v43 = vpop.f32.mrf.mxu0  ;;  %v508_v49 = vpop.f32.mrf.mxu1 }
 0x525   :  { %v513_v44 = vrot.slane %v488_v43, 2  ;;  %v514_v50 = vrot.slane %v508_v49, 2 }
 0x527   :  { %v517_v45 = vadd.f32 %v513_v44, %v1597_v33  ;;  %v518_v52 = vadd.f32 %v514_v50, %v1603_v41 }
 0x529   :  { %v1202_v46 = vmul.f32 -1.442695, %v517_v45  ;;  %v1203_v41 = vmul.f32 -1.442695, %v518_v52 }
 0x52b   :  { %1267 = vpow2.f32 %v1202_v46 }
 0x531   :  { %v1268_v47 = vpop.eup %1267 }
 0x532   :  { %v525_v48 = vadd.f32 1.0, %v1268_v47 }
 0x534   :  { %1269 = vrcp.f32 %v525_v48  ;;  %v538_v55 = vand.u32 2147483648, %v525_v48  ;;  %v536_v57 = vand.u32 2147483647, %v525_v48  ;;  %vm532_vm15 = vweird.f32 %v525_v48 }
 0x535   :  { %1271 = vtanh.f32 %v518_v52 }
 0x536   :  { %v539_v33 = vor.u32 1.1754944e-38, %v538_v55  ;;  %vm537_vm3 = vcmp.eq.f32.partialorder %v536_v57, 8.507059e+37  ;;  %1273 = vpow2.f32 %v1203_v41 }
 0x53a   :  { %v1270_v51 = vpop.eup %1269 }
 0x53b   :  { %v528_v53 = vmul.f32 %v1270_v51, %v525_v48  ;;  %vm533_vm14 = vweird.f32 %v1270_v51  ;;  %v1272_v61 = vpop.eup %1271 }
 0x53c   :  { %vm534_vm2 = vmor %vm532_vm15, %vm533_vm14  ;;  %v1274_v3 = vpop.eup %1273 }
 0x53d   :  { %v529_v54 = vsub.f32 1.0, %v528_v53  ;;  %v526_v5 = vadd.f32 1.0, %v1274_v3 }
 0x53f   :  { %v530_v56 = vmul.f32 %v1270_v51, %v529_v54  ;;  %1275 = vrcp.f32 %v526_v5  ;;  %v553_v28 = vand.u32 2147483648, %v526_v5  ;;  %vm547_vm5 = vweird.f32 %v526_v5 }
 0x540   :  { %v551_v30 = vand.u32 2147483647, %v526_v5 }
 0x541   :  { %v531_v58 = vadd.f32 %v1270_v51, %v530_v56  ;;  %v554_v35 = vor.u32 1.1754944e-38, %v553_v28 }
 0x542   :  { %vm552_vm7 = vcmp.eq.f32.partialorder %v551_v30, 8.507059e+37 }
 0x543   :  { %v535_v60 = vsel %vm534_vm2, %v1270_v51, %v531_v58 }
 0x544   :  { %v540_v62 = vsel %vm537_vm3, %v539_v33, %v535_v60  ;;  %vm678_vm3 = vcmask 517120  }
 0x545   :  { %v562_v63 = vmul.f32 %v1272_v61, %v540_v62  ;;  %v561_v2 = vmul.f32 %v559_v59, %v540_v62  ;;  %v1276_v9 = vpop.eup %1275 }
 0x546   :  { %v543_v10 = vmul.f32 %v1276_v9, %v526_v5  ;;  %vm548_vm4 = vweird.f32 %v1276_v9 }
 0x547   :  { %564 = vrot.lane.b32.xlu0 %v562_v63, %s1368_s17  ;;  %vm549_vm6 = vmor %vm547_vm5, %vm548_vm4 }
 0x548   :  { %v544_v14 = vsub.f32 1.0, %v543_v10 }
 0x54a   :  { %v545_v16 = vmul.f32 %v1276_v9, %v544_v14 }
 0x54c   :  { %v546_v25 = vadd.f32 %v1276_v9, %v545_v16 }
 0x54e   :  { %v550_v34 = vsel %vm549_vm6, %v1276_v9, %v546_v25 }
 0x54f   :  { %v555_v37 = vsel %vm552_vm7, %v554_v35, %v550_v34 }
 0x5b9   :  { %v565_v23 = vpop.permute.xlu0 %564 }
 0x5ba   :  { %v1700_v20 = vadd.f32 %v565_v23, %v561_v2 }
 0x5bc   :  { %1277 = vtanh.f32 %v1700_v20  ;;  %v663_v44 = vrot.slane %v1700_v20, 6 }
 0x5c2   :  { %v1278_v36 = vpop.eup %1277 }
 0x5c3   :  { %v1703_v38 = vmul.f32 %v1278_v36, %v555_v37 }
 0x5c5   :  { %v576_v40 = vrot.slane %v1703_v38, 6 }
 0x5c7   :  { %577 = vrot.lane.b32.xlu1 %v576_v40, %s1368_s17 }
 0x639   :  { %v578_v43 = vpop.permute.xlu1 %577 }
 0x63a   :  { %1204 = vmatmul.msk.f32.vlgmr.msra.gmra.mxu2 %vm138_vm1, %v578_v43  ;;  %1205 = vmatmul.msk.f32.vlgmr.msra.gmra.mxu3 %vm138_vm1, %v578_v43 }
 0x63b   :  { %1017 = vmatpush.msra.mxu2 %v1427_v0  ;;  %1037 = vmatpush.msra.mxu3 %v1443_v6 }
 0x63d   :  { %1018 = vmatpush.msra.mxu2 %v1429_v1  ;;  %1038 = vmatpush.msra.mxu3 %v1447_v7 }
 0x63f   :  { %1019 = vmatpush.msra.mxu2 %v1438_v4  ;;  %1039 = vmatpush.msra.mxu3 %v1460_v11  ;;  %v1729_v11 = vadd.f32 %v1638_v42, %v61_v39 }
 0x641   :  { %1020 = vmatpush.msra.mxu2 %v1449_v8  ;;  %1040 = vmatpush.msra.mxu3 %v1467_v13 }
 0x643   :  { %1021 = vmatpush.msra.mxu2 %v1462_v12  ;;  %1041 = vmatpush.msra.mxu3 %v1480_v17 }
 0x645   :  { %1022 = vmatpush.msra.mxu2 %v1472_v15  ;;  %1042 = vmatpush.msra.mxu3 %v1496_v21 }
 0x647   :  { %1023 = vmatpush.msra.mxu2 %v1487_v19  ;;  %1043 = vmatpush.msra.mxu3 %v1515_v26 }
 0x649   :  { %1024 = vmatpush.msra.mxu2 %v1498_v22  ;;  %1044 = vmatpush.msra.mxu3 %v1522_v27 }
 0x6bd   :  { %v598_v0 = vpop.f32.mrf.mxu2  ;;  %v618_v8 = vpop.f32.mrf.mxu3 }
 0x6be   :  { %v621_v1 = vadd.f32 %v598_v0, %v1595_v32  ;;  %v622_v13 = vadd.f32 %v618_v8, %v1729_v11 }
 0x6c0   :  { %v1206_v4 = vmul.f32 -1.442695, %v621_v1  ;;  %v1207_v47 = vmul.f32 -1.442695, %v622_v13 }
 0x6c2   :  { %1279 = vpow2.f32 %v1206_v4 }
 0x6c8   :  { %v1280_v6 = vpop.eup %1279 }
 0x6c9   :  { %v629_v7 = vadd.f32 1.0, %v1280_v6 }
 0x6cb   :  { %1281 = vrcp.f32 %v629_v7  ;;  %v642_v19 = vand.u32 2147483648, %v629_v7  ;;  %v640_v22 = vand.u32 2147483647, %v629_v7  ;;  %vm636_vm9 = vweird.f32 %v629_v7 }
 0x6cc   :  { %1283 = vtanh.f32 %v622_v13 }
 0x6cd   :  { %v643_v27 = vor.u32 1.1754944e-38, %v642_v19  ;;  %vm641_vm12 = vcmp.eq.f32.partialorder %v640_v22, 8.507059e+37  ;;  %1285 = vpow2.f32 %v1207_v47 }
 0x6d1   :  { %v1282_v12 = vpop.eup %1281 }
 0x6d2   :  { %v632_v15 = vmul.f32 %v1282_v12, %v629_v7  ;;  %vm637_vm8 = vweird.f32 %v1282_v12  ;;  %v1284_v39 = vpop.eup %1283 }
 0x6d3   :  { %vm638_vm11 = vmor %vm636_vm9, %vm637_vm8  ;;  %v1286_v48 = vpop.eup %1285 }
 0x6d4   :  { %v633_v17 = vsub.f32 1.0, %v632_v15  ;;  %v630_v49 = vadd.f32 1.0, %v1286_v48 }
 0x6d6   :  { %v634_v21 = vmul.f32 %v1282_v12, %v633_v17  ;;  %1287 = vrcp.f32 %v630_v49  ;;  %v657_v57 = vand.u32 2147483648, %v630_v49  ;;  %vm651_vm14 = vweird.f32 %v630_v49 }
 0x6d7   :  { %v655_v58 = vand.u32 2147483647, %v630_v49 }
 0x6d8   :  { %v635_v26 = vadd.f32 %v1282_v12, %v634_v21  ;;  %v658_v59 = vor.u32 1.1754944e-38, %v657_v57 }
 0x6d9   :  { %vm656_vm2 = vcmp.eq.f32.partialorder %v655_v58, 8.507059e+37 }
 0x6da   :  { %v639_v29 = vsel %vm638_vm11, %v1282_v12, %v635_v26 }
 0x6db   :  { %v644_v42 = vsel %vm641_vm12, %v643_v27, %v639_v29 }
 0x6dc   :  { %v666_v45 = vmul.f32 %v1284_v39, %v644_v42  ;;  %v665_v46 = vmul.f32 %v663_v44, %v644_v42  ;;  %v1288_v50 = vpop.eup %1287 }
 0x6dd   :  { %v647_v51 = vmul.f32 %v1288_v50, %v630_v49  ;;  %vm652_vm13 = vweird.f32 %v1288_v50 }
 0x6de   :  { %668 = vrot.lane.b32.xlu2 %v666_v45, %s1368_s17  ;;  %vm653_vm15 = vmor %vm651_vm14, %vm652_vm13 }
 0x6df   :  { %v648_v52 = vsub.f32 1.0, %v647_v51 }
 0x6e1   :  { %v649_v53 = vmul.f32 %v1288_v50, %v648_v52 }
 0x6e3   :  { %v650_v56 = vadd.f32 %v1288_v50, %v649_v53 }
 0x6e5   :  { %v654_v33 = vsel %vm653_vm15, %v1288_v50, %v650_v56 }
 0x6e6   :  { %v659_v61 = vsel %vm656_vm2, %v658_v59, %v654_v33 }
 0x738   :  { %v669_v54 = vpop.permute.xlu2 %668 }
 0x739   :  { %v671_v55 = vadd.f32 %v669_v54, %v665_v46 }
 0x73b   :  { %1289 = vtanh.f32 %v671_v55  ;;  %v770_v40 = vrot.slane %v671_v55, 6 }
 0x741   :  { %v1290_v60 = vpop.eup %1289 }
 0x742   :  { %v673_v62 = vmul.f32 %v1290_v60, %v659_v61 }
 0x744   :  { %675 = vrot.lane.b32.xlu0 %v673_v62, %s1368_s17 }
 0x7b6   :  { %v676_v63 = vpop.permute.xlu0 %675 }
 0x7b7   :  { %679 = vst.msk [vmem:[#allocation2 + $0x6] sm:$0x3] %vm678_vm3, %v676_v63  ;;  %1208 = vmatmul.msk.f32.vlgmr.msra.gmra.mxu0 %vm138_vm1, %v676_v63  ;;  %1209 = vmatmul.msk.f32.vlgmr.msra.gmra.mxu1 %vm138_vm1, %v676_v63 }
 0x834   :  { %v699_v2 = vpop.f32.mrf.mxu0  ;;  %v719_v14 = vpop.f32.mrf.mxu1 }
 0x835   :  { %v724_v41 = vrot.slane %v699_v2, 6  ;;  %v725_v16 = vrot.slane %v719_v14, 6 }
 0x837   :  { %v728_v3 = vadd.f32 %v724_v41, %v1595_v32  ;;  %v729_v20 = vadd.f32 %v725_v16, %v1729_v11 }
 0x839   :  { %v1210_v5 = vmul.f32 -1.442695, %v728_v3  ;;  %v1211_v7 = vmul.f32 -1.442695, %v729_v20 }
 0x83b   :  { %1291 = vpow2.f32 %v1210_v5 }
 0x841   :  { %v1292_v9 = vpop.eup %1291 }
 0x842   :  { %v736_v10 = vadd.f32 1.0, %v1292_v9 }
 0x844   :  { %1293 = vrcp.f32 %v736_v10  ;;  %v749_v30 = vand.u32 2147483648, %v736_v10  ;;  %v747_v35 = vand.u32 2147483647, %v736_v10  ;;  %vm743_vm5 = vweird.f32 %v736_v10 }
 0x845   :  { %1295 = vtanh.f32 %v729_v20 }
 0x846   :  { %v750_v37 = vor.u32 1.1754944e-38, %v749_v30  ;;  %vm748_vm7 = vcmp.eq.f32.partialorder %v747_v35, 8.507059e+37  ;;  %1297 = vpow2.f32 %v1211_v7 }
 0x84a   :  { %v1294_v23 = vpop.eup %1293 }
 0x84b   :  { %v739_v25 = vmul.f32 %v1294_v23, %v736_v10  ;;  %vm744_vm4 = vweird.f32 %v1294_v23  ;;  %v1296_v0 = vpop.eup %1295 }
 0x84c   :  { %vm745_vm6 = vmor %vm743_vm5, %vm744_vm4  ;;  %v1298_v8 = vpop.eup %1297 }
 0x84d   :  { %v740_v28 = vsub.f32 1.0, %v739_v25  ;;  %v737_v12 = vadd.f32 1.0, %v1298_v8 }
 0x84f   :  { %v741_v34 = vmul.f32 %v1294_v23, %v740_v28  ;;  %1299 = vrcp.f32 %v737_v12  ;;  %v764_v27 = vand.u32 2147483648, %v737_v12  ;;  %vm758_vm9 = vweird.f32 %v737_v12 }
 0x850   :  { %v762_v44 = vand.u32 2147483647, %v737_v12 }
 0x851   :  { %v742_v36 = vadd.f32 %v1294_v23, %v741_v34  ;;  %v765_v39 = vor.u32 1.1754944e-38, %v764_v27 }
 0x852   :  { %vm763_vm12 = vcmp.eq.f32.partialorder %v762_v44, 8.507059e+37 }
 0x853   :  { %v746_v43 = vsel %vm745_vm6, %v1294_v23, %v742_v36 }
 0x854   :  { %v751_v1 = vsel %vm748_vm7, %v750_v37, %v746_v43 }
 0x855   :  { %v773_v4 = vmul.f32 %v1296_v0, %v751_v1  ;;  %v772_v6 = vmul.f32 %v770_v40, %v751_v1  ;;  %v1300_v13 = vpop.eup %1299 }
 0x856   :  { %v754_v15 = vmul.f32 %v1300_v13, %v737_v12  ;;  %vm759_vm8 = vweird.f32 %v1300_v13 }
 0x857   :  { %775 = vrot.lane.b32.xlu1 %v773_v4, %s1368_s17  ;;  %vm760_vm11 = vmor %vm758_vm9, %vm759_vm8 }
 0x858   :  { %v755_v17 = vsub.f32 1.0, %v754_v15 }
 0x85a   :  { %v756_v19 = vmul.f32 %v1300_v13, %v755_v17 }
 0x85c   :  { %v757_v26 = vadd.f32 %v1300_v13, %v756_v19 }
 0x85e   :  { %v761_v29 = vsel %vm760_vm11, %v1300_v13, %v757_v26 }
 0x85f   :  { %v766_v45 = vsel %vm763_vm12, %v765_v39, %v761_v29 }
 0x8c9   :  { %v776_v21 = vpop.permute.xlu1 %775 }
 0x8ca   :  { %v778_v22 = vadd.f32 %v776_v21, %v772_v6 }
 0x8cc   :  { %1301 = vtanh.f32 %v778_v22  ;;  %v879_v41 = vrot.slane %v778_v22, 6 }
 0x8d2   :  { %v1302_v42 = vpop.eup %1301 }
 0x8d3   :  { %v1741_v46 = vmul.f32 %v1302_v42, %v766_v45 }
 0x8d5   :  { %v786_v47 = vrot.slane %v1741_v46, 2 }
 0x8d7   :  { %787 = vrot.lane.b32.xlu2 %v786_v47, %s1368_s17 }
 0x931   :  { %v788_v48 = vpop.permute.xlu2 %787 }
 0x932   :  { %1212 = vmatmul.msk.f32.vlgmr.msrb.gmra.mxu2 %vm138_vm1, %v788_v48  ;;  %1213 = vmatmul.msk.f32.vlgmr.msrb.gmra.mxu3 %vm138_vm1, %v788_v48 }
 0x9b5   :  { %v808_v49 = vpop.f32.mrf.mxu2  ;;  %v828_v55 = vpop.f32.mrf.mxu3 }
 0x9b6   :  { %v833_v50 = vrot.slane %v808_v49, 4  ;;  %v834_v56 = vrot.slane %v828_v55, 4 }
 0x9b8   :  { %v837_v51 = vadd.f32 %v833_v50, %v1595_v32  ;;  %v838_v58 = vadd.f32 %v834_v56, %v1729_v11 }
 0x9ba   :  { %v1214_v52 = vmul.f32 -1.442695, %v837_v51  ;;  %v1215_v16 = vmul.f32 -1.442695, %v838_v58 }
 0x9bc   :  { %1303 = vpow2.f32 %v1214_v52 }
 0x9c2   :  { %v1304_v53 = vpop.eup %1303 }
 0x9c3   :  { %v845_v54 = vadd.f32 1.0, %v1304_v53 }
 0x9c5   :  { %1305 = vrcp.f32 %v845_v54  ;;  %v858_v60 = vand.u32 2147483648, %v845_v54  ;;  %v856_v62 = vand.u32 2147483647, %v845_v54  ;;  %vm852_vm14 = vweird.f32 %v845_v54 }
 0x9c6   :  { %1307 = vtanh.f32 %v838_v58 }
 0x9c7   :  { %v859_v2 = vor.u32 1.1754944e-38, %v858_v60  ;;  %vm857_vm2 = vcmp.eq.f32.partialorder %v856_v62, 8.507059e+37  ;;  %1309 = vpow2.f32 %v1215_v16 }
 0x9cb   :  { %v1306_v57 = vpop.eup %1305 }
 0x9cc   :  { %v848_v33 = vmul.f32 %v1306_v57, %v845_v54  ;;  %vm853_vm13 = vweird.f32 %v1306_v57  ;;  %v1308_v5 = vpop.eup %1307 }
 0x9cd   :  { %vm854_vm15 = vmor %vm852_vm14, %vm853_vm13  ;;  %v1310_v23 = vpop.eup %1309 }
 0x9ce   :  { %v849_v59 = vsub.f32 1.0, %v848_v33  ;;  %v846_v20 = vadd.f32 1.0, %v1310_v23 }
 0x9d0   :  { %v850_v61 = vmul.f32 %v1306_v57, %v849_v59  ;;  %1311 = vrcp.f32 %v846_v20  ;;  %v873_v40 = vand.u32 2147483648, %v846_v20  ;;  %vm867_vm5 = vweird.f32 %v846_v20 }
 0x9d1   :  { %v871_v43 = vand.u32 2147483647, %v846_v20 }
 0x9d2   :  { %v851_v63 = vadd.f32 %v1306_v57, %v850_v61  ;;  %v874_v1 = vor.u32 1.1754944e-38, %v873_v40 }
 0x9d3   :  { %vm872_vm7 = vcmp.eq.f32.partialorder %v871_v43, 8.507059e+37 }
 0x9d4   :  { %v855_v3 = vsel %vm854_vm15, %v1306_v57, %v851_v63 }
 0x9d5   :  { %v860_v9 = vsel %vm857_vm2, %v859_v2, %v855_v3  ;;  %vm354_vm2 = vcmask 519170  }
 0x9d6   :  { %v882_v10 = vmul.f32 %v1308_v5, %v860_v9  ;;  %v881_v14 = vmul.f32 %v879_v41, %v860_v9  ;;  %v1312_v25 = vpop.eup %1311 }
 0x9d7   :  { %v863_v28 = vmul.f32 %v1312_v25, %v846_v20  ;;  %vm868_vm4 = vweird.f32 %v1312_v25 }
 0x9d8   :  { %884 = vrot.lane.b32.xlu0 %v882_v10, %s1368_s17  ;;  %vm869_vm6 = vmor %vm867_vm5, %vm868_vm4  ;;  %vm464_vm5 = vcmask 521220  }
 0x9d9   :  { %v864_v30 = vsub.f32 1.0, %v863_v28 }
 0x9db   :  { %v865_v34 = vmul.f32 %v1312_v25, %v864_v30 }
 0x9dd   :  { %v866_v37 = vadd.f32 %v1312_v25, %v865_v34 }
 0x9df   :  { %v870_v0 = vsel %vm869_vm6, %v1312_v25, %v866_v37 }
 0x9e0   :  { %v875_v6 = vsel %vm872_vm7, %v874_v1, %v870_v0 }
 0xa4a   :  { %v885_v35 = vpop.permute.xlu0 %884 }
 0xa4b   :  { %v887_v36 = vadd.f32 %v885_v35, %v881_v14 }
 0xa4d   :  { %1313 = vtanh.f32 %v887_v36  ;;  %v988_v51 = vrot.slane %v887_v36, 6 }
 0xa53   :  { %v1314_v4 = vpop.eup %1313 }
 0xa54   :  { %v1750_v7 = vmul.f32 %v1314_v4, %v875_v6 }
 0xa56   :  { %v895_v8 = vrot.slane %v1750_v7, 4 }
 0xa58   :  { %896 = vrot.lane.b32.xlu1 %v895_v8, %s1368_s17 }
 0xaca   :  { %v897_v12 = vpop.permute.xlu1 %896 }
 0xacb   :  { %1216 = vmatmul.msk.f32.vlgmr.msrb.gmra.mxu0 %vm138_vm1, %v897_v12  ;;  %1217 = vmatmul.msk.f32.vlgmr.msrb.gmra.mxu1 %vm138_vm1, %v897_v12 }
 0xb48   :  { %v917_v13 = vpop.f32.mrf.mxu0  ;;  %v937_v26 = vpop.f32.mrf.mxu1 }
 0xb49   :  { %v942_v15 = vrot.slane %v917_v13, 2  ;;  %v943_v27 = vrot.slane %v937_v26, 2 }
 0xb4b   :  { %v946_v17 = vadd.f32 %v942_v15, %v1595_v32  ;;  %v947_v29 = vadd.f32 %v943_v27, %v1729_v11  ;;  %v1135_v27 = vld [vmem:[%s1853_s4 + $0x38] sm:$0xff] }
 0xb4c   :  { %1154 = vmatpush.msra.mxu0 %v1135_v27 }
 0xb4d   :  { %v1218_v19 = vmul.f32 -1.442695, %v946_v17  ;;  %v1219_v57 = vmul.f32 -1.442695, %v947_v29 }
 0xb4f   :  { %1315 = vpow2.f32 %v1218_v19 }
 0xb55   :  { %v1316_v21 = vpop.eup %1315 }
 0xb56   :  { %v954_v22 = vadd.f32 1.0, %v1316_v21 }
 0xb58   :  { %1317 = vrcp.f32 %v954_v22  ;;  %v967_v45 = vand.u32 2147483648, %v954_v22  ;;  %v965_v48 = vand.u32 2147483647, %v954_v22  ;;  %vm961_vm9 = vweird.f32 %v954_v22 }
 0xb59   :  { %1319 = vtanh.f32 %v947_v29  ;;  %v1133_v29 = vld [vmem:[%s1853_s4 + $0x28] sm:$0xff] }
 0xb5a   :  { %v968_v50 = vor.u32 1.1754944e-38, %v967_v45  ;;  %vm966_vm12 = vcmp.eq.f32.partialorder %v965_v48, 8.507059e+37  ;;  %1321 = vpow2.f32 %v1219_v57  ;;  %v1130_v45 = vld [vmem:[%s1853_s4 + $0x10] sm:$0xff]  ;;  %v1128_v48 = vld [vmem:[%s1853_s4] sm:$0xff] }
 0xb5e   :  { %v1318_v44 = vpop.eup %1317 }
 0xb5f   :  { %v957_v39 = vmul.f32 %v1318_v44, %v954_v22  ;;  %vm962_vm8 = vweird.f32 %v1318_v44  ;;  %v1320_v53 = vpop.eup %1319 }
 0xb60   :  { %vm963_vm11 = vmor %vm961_vm9, %vm962_vm8  ;;  %v1322_v58 = vpop.eup %1321 }
 0xb61   :  { %v958_v42 = vsub.f32 1.0, %v957_v39  ;;  %v955_v33 = vadd.f32 1.0, %v1322_v58 }
 0xb63   :  { %v959_v47 = vmul.f32 %v1318_v44, %v958_v42  ;;  %1323 = vrcp.f32 %v955_v33  ;;  %v982_v3 = vand.u32 2147483648, %v955_v33  ;;  %vm976_vm14 = vweird.f32 %v955_v33  ;;  %v1131_v42 = vld [vmem:[%s1853_s4 + $0x18] sm:$0xff] }
 0xb64   :  { %v980_v5 = vand.u32 2147483647, %v955_v33 }
 0xb65   :  { %v960_v49 = vadd.f32 %v1318_v44, %v959_v47  ;;  %v983_v9 = vor.u32 1.1754944e-38, %v982_v3  ;;  %v1129_v47 = vld [vmem:[%s1853_s4 + $0x8] sm:$0xff] }
 0xb66   :  { %vm981_vm4 = vcmp.eq.f32.partialorder %v980_v5, 8.507059e+37 }
 0xb67   :  { %v964_v52 = vsel %vm963_vm11, %v1318_v44, %v960_v49  ;;  %v1134_v44 = vld [vmem:[%s1853_s4 + $0x30] sm:$0xff] }
 0xb68   :  { %v969_v54 = vsel %vm966_vm12, %v968_v50, %v964_v52  ;;  %1155 = vmatpush.msra.mxu0 %v1134_v44 }
 0xb69   :  { %v991_v55 = vmul.f32 %v1320_v53, %v969_v54  ;;  %v990_v56 = vmul.f32 %v988_v51, %v969_v54  ;;  %v1324_v59 = vpop.eup %1323 }
 0xb6a   :  { %v972_v60 = vmul.f32 %v1324_v59, %v955_v33  ;;  %vm977_vm13 = vweird.f32 %v1324_v59  ;;  %1156 = vmatpush.msra.mxu0 %v1133_v29 }
 0xb6b   :  { %993 = vrot.lane.b32.xlu2 %v991_v55, %s1368_s17  ;;  %vm978_vm15 = vmor %vm976_vm14, %vm977_vm13  ;;  %vm574_vm14 = vcmask 523270  }
 0xb6c   :  { %v973_v61 = vsub.f32 1.0, %v972_v60 }
 0xb6e   :  { %v974_v62 = vmul.f32 %v1324_v59, %v973_v61 }
 0xb70   :  { %v975_v41 = vadd.f32 %v1324_v59, %v974_v62 }
 0xb73   :  { %351 = vrot.lane.b32.xlu2 %v1645_v24, %s1368_s17  ;;  %v979_v24 = vsel %vm978_vm15, %v1324_v59, %v975_v41 }
 0xb74   :  { %v984_v16 = vsel %vm981_vm4, %v983_v9, %v979_v24 }
 0xbc5   :  { %v994_v63 = vpop.permute.xlu2 %993 }
 0xbc6   :  { %v1761_v2 = vadd.f32 %v994_v63, %v990_v56 }
 0xbc8   :  { %1325 = vtanh.f32 %v1761_v2  ;;  %v1106_v25 = vrot.slane %v1761_v2, 6 }
 0xbcd   :  { %v352_v10 = vpop.permute.xlu2 %351 }
 0xbce   :  { %v1326_v14 = vpop.eup %1325  ;;  %355 = vst.msk [vmem:[#allocation2 - $0x2] sm:$0xc] %vm354_vm2, %v352_v10 }
 0xbcf   :  { %v1765_v23 = vmul.f32 %v1326_v14, %v984_v16 }
 0xbd1   :  { %v1004_v20 = vrot.slane %v1765_v23, 6 }
 0xbd3   :  { %1005 = vrot.lane.b32.xlu0 %v1004_v20, %s1368_s17 }
 0xbdb   :  { %461 = vrot.lane.b32.xlu0 %v1674_v18, %s1368_s17 }
 0xbe3   :  { %782 = vrot.lane.b32.xlu0 %v1741_v46, %s1368_s17 }
 0xbeb   :  { %1107 = vrot.lane.b32.xlu0 %v1106_v25, %s1368_s17  ;;  %v1230_v25 = vld [vmem:[%s1854_s5] ss:$0 sm:$0xff] }
 0xc45   :  { %v1775_v28 = vpop.permute.xlu0 %1005 }
 0xc46   :  { %1220 = vmatmul.msk.f32.vlgmr.msra.gmra.mxu2 %vm138_vm1, %v1775_v28  ;;  %1221 = vmatmul.msk.f32.vlgmr.msra.gmra.mxu3 %vm138_vm1, %v1775_v28 }
 0xc4d   :  { %v462_v30 = vpop.permute.xlu0 %461 }
 0xc4e   :  { %465 = vst.msk [vmem:[#allocation2 - $0x2] sm:$0x30] %vm464_vm5, %v462_v30 }
 0xc55   :  { %v783_v18 = vpop.permute.xlu0 %782 }
 0xc56   :  { %785 = vst.msk [vmem:[#allocation2 + $0x6] sm:$0xc] %vm354_vm2, %v783_v18 }
 0xc5d   :  { %v1108_v14 = vpop.permute.xlu0 %1107 }
 0xcc9   :  { %v1026_v46 = vpop.f32.mrf.mxu2  ;;  %v1046_v43 = vpop.f32.mrf.mxu3 }
 0xcca   :  { %v1051_v34 = vrot.slane %v1026_v46, 2  ;;  %v1052_v0 = vrot.slane %v1046_v43, 2 }
 0xccc   :  { %v1055_v35 = vadd.f32 %v1051_v34, %v1595_v32  ;;  %v1056_v4 = vadd.f32 %v1052_v0, %v1729_v11 }
 0xcce   :  { %v1222_v36 = vmul.f32 -1.442695, %v1055_v35  ;;  %v1223_v11 = vmul.f32 -1.442695, %v1056_v4 }
 0xcd0   :  { %1327 = vpow2.f32 %v1222_v36 }
 0xcd6   :  { %v1328_v37 = vpop.eup %1327 }
 0xcd7   :  { %v1063_v40 = vadd.f32 1.0, %v1328_v37 }
 0xcd9   :  { %1329 = vrcp.f32 %v1063_v40  ;;  %v1076_v12 = vand.u32 2147483648, %v1063_v40  ;;  %v1074_v15 = vand.u32 2147483647, %v1063_v40  ;;  %vm1070_vm7 = vweird.f32 %v1063_v40 }
 0xcda   :  { %1331 = vtanh.f32 %v1056_v4 }
 0xcdb   :  { %v1077_v32 = vor.u32 1.1754944e-38, %v1076_v12  ;;  %vm1075_vm9 = vcmp.eq.f32.partialorder %v1074_v15, 8.507059e+37  ;;  %1333 = vpow2.f32 %v1223_v11 }
 0xcdf   :  { %v1330_v1 = vpop.eup %1329 }
 0xce0   :  { %v1066_v6 = vmul.f32 %v1330_v1, %v1063_v40  ;;  %vm1071_vm6 = vweird.f32 %v1330_v1  ;;  %v1332_v21 = vpop.eup %1331 }
 0xce1   :  { %vm1072_vm8 = vmor %vm1070_vm7, %vm1071_vm6 }
 0xce2   :  { %v1067_v8 = vsub.f32 1.0, %v1066_v6 }
 0xce4   :  { %v1068_v13 = vmul.f32 %v1330_v1, %v1067_v8 }
 0xce6   :  { %v1069_v17 = vadd.f32 %v1330_v1, %v1068_v13 }
 0xce8   :  { %v1073_v19 = vsel %vm1072_vm8, %v1330_v1, %v1069_v17 }
 0xce9   :  { %v1078_v22 = vsel %vm1075_vm9, %v1077_v32, %v1073_v19 }
 0xcea   :  { %v1097_v26 = vmul.f32 %v1332_v21, %v1078_v22  ;;  %v1096_v53 = vmul.f32 %v1078_v22, %v1761_v2 }
 0xcec   :  { %1099 = vrot.lane.b32.xlu1 %v1097_v26, %s1368_s17 }
 0xcf4   :  { %571 = vrot.lane.b32.xlu1 %v1703_v38, %s1368_s17  ;;  %v1334_v38 = vpop.eup %1333 }
 0xcf5   :  { %v1064_v39 = vadd.f32 1.0, %v1334_v38 }
 0xcf7   :  { %1335 = vrcp.f32 %v1064_v39  ;;  %v1091_v58 = vand.u32 2147483648, %v1064_v39  ;;  %vm1085_vm12 = vweird.f32 %v1064_v39  ;;  %v1089_v33 = vand.u32 2147483647, %v1064_v39 }
 0xcf9   :  { %v1092_v60 = vor.u32 1.1754944e-38, %v1091_v58  ;;  %vm1090_vm15 = vcmp.eq.f32.partialorder %v1089_v33, 8.507059e+37 }
 0xcfc   :  { %891 = vrot.lane.b32.xlu1 %v1750_v7, %s1368_s17  ;;  %v1132_v7 = vld [vmem:[%s1853_s4 + $0x20] sm:$0xff] }
 0xcfd   :  { %1157 = vmatpush.msra.mxu0 %v1132_v7  ;;  %v1336_v49 = vpop.eup %1335 }
 0xcfe   :  { %v1081_v50 = vmul.f32 %v1336_v49, %v1064_v39  ;;  %vm1086_vm11 = vweird.f32 %v1336_v49 }
 0xcff   :  { %1158 = vmatpush.msra.mxu0 %v1131_v42  ;;  %vm1087_vm13 = vmor %vm1085_vm12, %vm1086_vm11 }
 0xd00   :  { %v1082_v51 = vsub.f32 1.0, %v1081_v50 }
 0xd01   :  { %1159 = vmatpush.msra.mxu0 %v1130_v45 }
 0xd02   :  { %v1083_v52 = vmul.f32 %v1336_v49, %v1082_v51 }
 0xd03   :  { %1160 = vmatpush.msra.mxu0 %v1129_v47 }
 0xd04   :  { %v1084_v56 = vadd.f32 %v1336_v49, %v1083_v52 }
 0xd05   :  { %1161 = vmatpush.msra.mxu0 %v1128_v48 }
 0xd06   :  { %v1088_v59 = vsel %vm1087_vm13, %v1336_v49, %v1084_v56 }
 0xd07   :  { %v1093_v63 = vsel %vm1090_vm15, %v1092_v60, %v1088_v59 }
 0xd5e   :  { %v1100_v54 = vpop.permute.xlu1 %1099 }
 0xd5f   :  { %v1102_v55 = vadd.f32 %v1100_v54, %v1096_v53 }
 0xd61   :  { %1337 = vtanh.f32 %v1102_v55  ;;  %v1111_v57 = vrot.slane %v1102_v55, 6 }
 0xd63   :  { %1112 = vrot.lane.b32.xlu1 %v1111_v57, %s1368_s17 }
 0xd66   :  { %v572_v61 = vpop.permute.xlu1 %571 }
 0xd67   :  { %v1338_v62 = vpop.eup %1337  ;;  %575 = vst.msk [vmem:[#allocation2 - $0x2] sm:$0xc0] %vm574_vm14, %v572_v61 }
 0xd68   :  { %v1104_v2 = vmul.f32 %v1338_v62, %v1093_v63 }
 0xd6a   :  { %v1118_v41 = vrot.slane %v1104_v2, 6 }
 0xd6c   :  { %1119 = vrot.lane.b32.xlu2 %v1118_v41, %s1368_s17 }
 0xd6e   :  { %v892_v3 = vpop.permute.xlu1 %891  ;;  %v1126_v5 = vld [vmem:[#allocation2] sm:$0xff] }
 0xd6f   :  { %894 = vst.msk [vmem:[#allocation2 + $0x6] sm:$0x30] %vm464_vm5, %v892_v3  ;;  %1224 = vmatmul.msk.f32.vlgmr.msra.gmra.mxu0 %vm138_vm1, %v1126_v5 }
 0xd74   :  { %1000 = vrot.lane.b32.xlu2 %v1765_v23, %s1368_s17 }
 0xdc6   :  { %v1120_v24 = vpop.permute.xlu2 %1119 }
 0xdc7   :  { %v1122_v9 = vsel %vm137_vm10, %v1775_v28, %v1120_v24 }
 0xdc8   :  { %1123 = vst.msk [vmem:[#allocation2 + $0xe] sm:$0x3] %vm678_vm3, %v1122_v9 }
 0xdc9   :  { %1124 = vst.msk [vmem:[%s1858_s9] sm:$0x3] %vm678_vm3, %v1122_v9 }
 0xdce   :  { %v1001_v10 = vpop.permute.xlu2 %1000 }
 0xdcf   :  { %1003 = vst.msk [vmem:[#allocation2 + $0x6] sm:$0xc0] %vm574_vm14, %v1001_v10 }
 0xdd5   :  { %v1113_v16 = vpop.permute.xlu1 %1112 }
 0xdd6   :  { %v1115_v23 = vsel %vm137_vm10, %v1108_v14, %v1113_v16  ;;  %v1127_v20 = vld [vmem:[#allocation2 + $0x8] sm:$0xff] }
 0xdd7   :  { %1125 = vst.msk [vmem:[%s1859_s10] sm:$0x3] %vm678_vm3, %v1115_v23  ;;  %1225 = vmatmul.msk.f32.gmra.mxu0 %vm138_vm1, %v1127_v20 }
 0xdec   :  { %v1163_v28 = vpop.f32.mrf.mxu0 }
 0xded   :  { %v1164_v30 = vadd.f32 %v1230_v25, %v1163_v28 }
 0xdef   :  { %1169 = vst.msk [vmem:[%s1857_s8] sm:$0xff] %vm64_vm0, %v1164_v30 }
 0xe54   :  { %v1166_v31 = vpop.f32.mrf.mxu0 }
 0xe55   :  { %v1167_v18 = vadd.f32 %v1230_v25, %v1166_v31 }
 0xe57   :  { %1170 = vst.msk [vmem:[%s1857_s8 + $0x8] sm:$0xff] %vm64_vm0, %v1167_v18 }
 0xe58   :  { %1183 = vsyncpa [#allocation4], 1 }

</bundles_post_ra>
